<compile_context>
chip_gen: v6e
topology: v6e:2x2x1
jax: 0.10.0
libtpu: 0.0.40
codegen_flags: <defaults>
</compile_context>

<pallas_src>
import jax
import jax.numpy as jnp
from jax.experimental import pallas as pl
from jax.experimental.pallas import tpu as pltpu


def _round_up(x, m):
    return (x + m - 1) // m * m


# ----------------------------------------------------------------------------
# Pallas kernel: LSTM recurrence over time (input projection precomputed) + MLP
# ----------------------------------------------------------------------------
def kprn_recurrence_kernel(lens_ref,     # VMEM (TB, 128)     int32 per-row lengths
                           xproj_ref,    # VMEM (S, TB, 4Hp)  bf16  x@W_ih + b
                           whh_ref,      # VMEM (Hp, 4Hp)     bf16  W_hh^T (gate-padded)
                           w1_ref,       # VMEM (Hp, Hp)      bf16  linear1.weight^T
                           b1_ref,       # VMEM (1, Hp)       f32
                           w2_ref,       # VMEM (Hp, Tp)      bf16  linear2.weight^T
                           b2_ref,       # VMEM (1, Tp)       f32
                           out_ref):     # VMEM (TB, Tp)      f32
    Hp = whh_ref.shape[0]
    TB = lens_ref.shape[0]
    S = xproj_ref.shape[0]

    def sigmoid_t(x):
        # sigmoid(x) == 0.5 * tanh(0.5 * x) + 0.5  -> single EUP push
        return 0.5 * jnp.tanh(0.5 * x) + 0.5

    h0 = jnp.zeros((TB, Hp), jnp.float32)
    hb0 = jnp.zeros((TB, Hp), jnp.bfloat16)
    c0 = jnp.zeros((TB, Hp), jnp.float32)

    def step(t, carry):
        h, h_b16, c = carry
        # only the unavoidable h @ W_hh dependency stays on the critical path;
        # the bf16 operand was produced (and carried) by the previous step.
        gates = (xproj_ref[t].astype(jnp.float32)
                 + jnp.dot(h_b16, whh_ref[...],
                           preferred_element_type=jnp.float32))
        # PyTorch gate order [i, f, g, o]; Hp is a multiple of 128 so every
        # slice below is lane-aligned.
        i_g = sigmoid_t(gates[:, 0 * Hp:1 * Hp])
        f_g = sigmoid_t(gates[:, 1 * Hp:2 * Hp])
        g_g = jnp.tanh(gates[:, 2 * Hp:3 * Hp])
        o_g = sigmoid_t(gates[:, 3 * Hp:4 * Hp])

        c_new = f_g * c + i_g * g_g
        h_new = o_g * jnp.tanh(c_new)

        # pack_padded_sequence semantics: freeze h for rows with length <= t.
        # One-vreg compare; static tile if Hp > 128 (Hp is a trace-time int).
        mask = t < lens_ref[...]                    # (TB, 128) bool
        if Hp != 128:
            mask = jnp.tile(mask, (1, Hp // 128))
        h_sel = jnp.where(mask, h_new, h)
        # NOTE: c is intentionally NOT masked; frozen rows' c only feeds
        # h_new, which the h-mask discards on every later step.
        return h_sel, h_sel.astype(jnp.bfloat16), c_new

    unroll = True if S <= 16 else 4
    h_last, _, _ = jax.lax.fori_loop(0, S, step, (h0, hb0, c0), unroll=unroll)

    # MLP head: linear2(relu(linear1(h))).  With Hp = Tp = 128 each matmul is
    # a single MXU tile on v5e and comfortably one pass on v6e/v7x.
    hid = jnp.maximum(
        jnp.dot(h_last.astype(jnp.bfloat16), w1_ref[...],
                preferred_element_type=jnp.float32) + b1_ref[...], 0.0)
    out_ref[...] = (jnp.dot(hid.astype(jnp.bfloat16), w2_ref[...],
                            preferred_element_type=jnp.float32) + b2_ref[...])


# ----------------------------------------------------------------------------
# Wrapper: embedding gathers, hoisted input projection, padding, pallas_call
# ----------------------------------------------------------------------------
def kprn_forward(paths, path_lengths, params):
    """paths: int32 [batch, seq_len, 3]; path_lengths: int32 [batch]."""
    batch, seq_len, _ = paths.shape
    hidden = params["w_hh"].shape[0]
    tagset = params["w2"].shape[1]

    Hp = _round_up(hidden, 128)   # lane-aligned gate blocks
    Tp = _round_up(tagset, 128)   # lane-dense output store
    Bp = _round_up(batch, 8)      # sublane-dense batch
    # batch tile: bounds the per-program gates footprint and lets the
    # "parallel" grid axis shard across TensorCores on v7x.
    TILE_B = 64 if (Bp >= 64 and Bp % 64 == 0) else Bp
    num_tiles = Bp // TILE_B

    # ---- embedding gathers + concat (same as the PyTorch prologue) ----
    t_paths = jnp.transpose(paths, (0, 2, 1))                  # (B, 3, S)
    ent = params["e_emb"][t_paths[:, 0, :]]
    typ = params["t_emb"][t_paths[:, 1, :]]
    rel = params["r_emb"][t_paths[:, 2, :]]
    triplet = jnp.concatenate((ent, typ, rel), axis=2)         # (B, S, F)
    x = jnp.transpose(triplet, (1, 0, 2)).astype(jnp.float32)  # (S, B, F)
    x = jnp.pad(x, ((0, 0), (0, Bp - batch), (0, 0)))          # (S, Bp, F)

    # ---- pad weights; each gate block [i|f|g|o] padded to Hp lanes ----
    # (padded gate lanes produce i=f=o=0.5, g=0, so padded h/c lanes stay 0;
    #  W1's padded rows are zero so the head is unaffected -- keep them zero.)
    def pad_gate_cols(w):
        lead = w.shape[:-1]
        w4 = w.reshape(lead + (4, hidden))
        w4 = jnp.pad(w4, [(0, 0)] * len(lead) + [(0, 0), (0, Hp - hidden)])
        return w4.reshape(lead + (4 * Hp,))

    wih_p = pad_gate_cols(params["w_ih"]).astype(jnp.bfloat16)            # (F, 4Hp)
    whh_p = pad_gate_cols(
        jnp.pad(params["w_hh"], ((0, Hp - hidden), (0, 0)))).astype(jnp.bfloat16)
    bg_p = pad_gate_cols(params["b_gate"]).astype(jnp.float32)            # (1, 4Hp)
    w1_p = jnp.pad(params["w1"], ((0, Hp - hidden), (0, Hp - hidden))
                   ).astype(jnp.bfloat16)
    b1_p = jnp.pad(params["b1"], ((0, 0), (0, Hp - hidden))).astype(jnp.float32)
    w2_p = jnp.pad(params["w2"], ((0, Hp - hidden), (0, Tp - tagset))
                   ).astype(jnp.bfloat16)
    b2_p = jnp.pad(params["b2"], ((0, 0), (0, Tp - tagset))).astype(jnp.float32)

    # ---- hoisted input projection: one big MXU matmul over all timesteps;
    # stored bf16 so VMEM residency is halved (important for v7x / big shapes).
    xproj = (jnp.einsum('sbf,fg->sbg', x.astype(jnp.bfloat16), wih_p,
                        preferred_element_type=jnp.float32)
             + bg_p)                                           # (S, Bp, 4Hp)
    xproj_b16 = xproj.astype(jnp.bfloat16)

    lens = jnp.pad(path_lengths.astype(jnp.int32), (0, Bp - batch))       # (Bp,)
    lens_mat = jnp.broadcast_to(lens[:, None], (Bp, 128)).astype(jnp.int32)

    out_p = pl.pallas_call(
        kprn_recurrence_kernel,
        out_shape=jax.ShapeDtypeStruct((Bp, Tp), jnp.float32),
        grid=(num_tiles,),
        in_specs=[
            pl.BlockSpec((TILE_B, 128), lambda b: (b, 0)),            # lens
            pl.BlockSpec((seq_len, TILE_B, 4 * Hp), lambda b: (0, b, 0)),  # xproj
            pl.BlockSpec((Hp, 4 * Hp), lambda b: (0, 0)),             # W_hh^T
            pl.BlockSpec((Hp, Hp), lambda b: (0, 0)),                 # W1^T
            pl.BlockSpec((1, Hp), lambda b: (0, 0)),                  # b1
            pl.BlockSpec((Hp, Tp), lambda b: (0, 0)),                 # W2^T
            pl.BlockSpec((1, Tp), lambda b: (0, 0)),                  # b2
        ],
        out_specs=pl.BlockSpec((TILE_B, Tp), lambda b: (b, 0)),
        compiler_params=pltpu.CompilerParams(
            dimension_semantics=("parallel",),
            vmem_limit_bytes=48 * 1024 * 1024),
    )(lens_mat, xproj_b16, whh_p, w1_p, b1_p, w2_p, b2_p)

    return out_p[:batch, :tagset]


# ----------------------------------------------------------------------------
# Pure-JAX f32 reference (mirrors the PyTorch forward) for validation
# ----------------------------------------------------------------------------
def kprn_reference(paths, path_lengths, params):
    t_paths = jnp.transpose(paths, (0, 2, 1))
    ent = params["e_emb"][t_paths[:, 0, :]]
    typ = params["t_emb"][t_paths[:, 1, :]]
    rel = params["r_emb"][t_paths[:, 2, :]]
    x = jnp.transpose(jnp.concatenate((ent, typ, rel), axis=2), (1, 0, 2))
    S, B, _ = x.shape
    H = params["w_hh"].shape[0]
    h = jnp.zeros((B, H), jnp.float32)
    c = jnp.zeros((B, H), jnp.float32)
    for t in range(S):
        gates = x[t] @ params["w_ih"] + h @ params["w_hh"] + params["b_gate"]
        i_g = jax.nn.sigmoid(gates[:, 0 * H:1 * H])
        f_g = jax.nn.sigmoid(gates[:, 1 * H:2 * H])
        g_g = jnp.tanh(gates[:, 2 * H:3 * H])
        o_g = jax.nn.sigmoid(gates[:, 3 * H:4 * H])
        c_new = f_g * c + i_g * g_g
        h_new = o_g * jnp.tanh(c_new)
        m = (t < path_lengths)[:, None]
        h = jnp.where(m, h_new, h)
        c = jnp.where(m, c_new, c)
    hid = jnp.maximum(h @ params["w1"] + params["b1"], 0.0)
    return hid @ params["w2"] + params["b2"]


def init_params(key, e_emb_dim, t_emb_dim, r_emb_dim, hidden_dim,
                e_vocab, t_vocab, r_vocab, tagset_size):
    ks = jax.random.split(key, 12)
    feat = e_emb_dim + t_emb_dim + r_emb_dim

    def u(k, shape, scale=0.1):
        return jax.random.uniform(k, shape, jnp.float32, -scale, scale)

    # weights stored pre-transposed: y = x @ W^T + b  ->  store W^T directly.
    return {
        "e_emb": u(ks[0], (e_vocab, e_emb_dim), 1.0),
        "t_emb": u(ks[1], (t_vocab, t_emb_dim), 1.0),
        "r_emb": u(ks[2], (r_vocab, r_emb_dim), 1.0),
        "w_ih": u(ks[3], (feat, 4 * hidden_dim)),          # weight_ih_l0^T
        "w_hh": u(ks[4], (hidden_dim, 4 * hidden_dim)),    # weight_hh_l0^T
        "b_gate": u(ks[5], (1, 4 * hidden_dim)) + u(ks[6], (1, 4 * hidden_dim)),
        "w1": u(ks[7], (hidden_dim, hidden_dim)),          # linear1.weight^T
        "b1": u(ks[8], (1, hidden_dim)),
        "w2": u(ks[9], (hidden_dim, tagset_size)),         # linear2.weight^T
        "b2": u(ks[10], (1, tagset_size)),
    }


if __name__ == "__main__":
    batch, seq_len = 4, 8
    e_emb_dim = t_emb_dim = r_emb_dim = 16          # feat = 48
    hidden_dim = 32
    e_vocab, t_vocab, r_vocab = 50, 20, 10
    tagset_size = 2

    key = jax.random.PRNGKey(0)
    pkey, ekey, tkey, rkey = jax.random.split(key, 4)

    params = init_params(pkey, e_emb_dim, t_emb_dim, r_emb_dim, hidden_dim,
                         e_vocab, t_vocab, r_vocab, tagset_size)

    ent_ids = jax.random.randint(ekey, (batch, seq_len, 1), 0, e_vocab)
    typ_ids = jax.random.randint(tkey, (batch, seq_len, 1), 0, t_vocab)
    rel_ids = jax.random.randint(rkey, (batch, seq_len, 1), 0, r_vocab)
    paths = jnp.concatenate((ent_ids, typ_ids, rel_ids), axis=2).astype(jnp.int32)

    # pack_padded_sequence expects lengths sorted in decreasing order
    path_lengths = jnp.array([6, 5, 3, 2], dtype=jnp.int32)

    fwd = jax.jit(kprn_forward)
    tag_scores = fwd(paths, path_lengths, params)
    jax.block_until_ready(tag_scores)

    assert tag_scores.shape == (batch, tagset_size)

    ref = kprn_reference(paths, path_lengths, params)
    # NOTE: bf16 MXU operands + bf16 xproj storage drift with long paths /
    # large hidden dims; 5e-2 is ample at S=8, H=32.
    err = float(jnp.max(jnp.abs(tag_scores - ref)))
    assert err < 5e-2, f"max abs error vs reference: {err}"

    print("KERNEL_OK")
</pallas_src>

<mosaic_0001>
module attributes {stable_mosaic.version = 11 : i64} {
  func.func @kprn_recurrence_kernel(%arg0: i32, %arg1: memref<8x128xi32, #tpu.memory_space<vmem>>, %arg2: memref<8x8x512xbf16, #tpu.memory_space<vmem>>, %arg3: memref<128x512xbf16, #tpu.memory_space<vmem>>, %arg4: memref<128x128xbf16, #tpu.memory_space<vmem>>, %arg5: memref<1x128xf32, #tpu.memory_space<vmem>>, %arg6: memref<128x128xbf16, #tpu.memory_space<vmem>>, %arg7: memref<1x128xf32, #tpu.memory_space<vmem>>, %arg8: memref<8x128xf32, #tpu.memory_space<vmem>>) attributes {dimension_semantics = [#tpu.dimension_semantics<parallel>], iteration_bounds = array<i64: 1>, scalar_prefetch = 0 : i64, scratch_operands = 0 : i64, tpu.core_type = #tpu.core_type<tc>, window_params = [{transform_indices = @transform_0, window_bounds = array<i64: 8, 128>}, {transform_indices = @transform_1, window_bounds = array<i64: 8, 8, 512>}, {pipeline_mode = #tpu.pipeline_mode<synchronous>, transform_indices = @transform_2, window_bounds = array<i64: 128, 512>}, {pipeline_mode = #tpu.pipeline_mode<synchronous>, transform_indices = @transform_3, window_bounds = array<i64: 128, 128>}, {pipeline_mode = #tpu.pipeline_mode<synchronous>, transform_indices = @transform_4, window_bounds = array<i64: 1, 128>}, {pipeline_mode = #tpu.pipeline_mode<synchronous>, transform_indices = @transform_5, window_bounds = array<i64: 128, 128>}, {pipeline_mode = #tpu.pipeline_mode<synchronous>, transform_indices = @transform_6, window_bounds = array<i64: 1, 128>}, {transform_indices = @transform_7, window_bounds = array<i64: 8, 128>}]} {
    %cst = arith.constant 0.000000e+00 : f32
    %0 = vector.broadcast %cst : f32 to vector<8x128xf32>
    %cst_0 = arith.constant 0.000000e+00 : bf16
    %1 = vector.broadcast %cst_0 : bf16 to vector<8x128xbf16>
    %cst_1 = arith.constant 0.000000e+00 : f32
    %2 = vector.broadcast %cst_1 : f32 to vector<8x128xf32>
    %c0_i32 = arith.constant 0 : i32
    %3 = arith.index_cast %c0_i32 : i32 to index
    %c0 = arith.constant 0 : index
    %c0_2 = arith.constant 0 : index
    %4 = vector.load %arg2[%3, %c0, %c0_2] : memref<8x8x512xbf16, #tpu.memory_space<vmem>>, vector<1x8x512xbf16>
    %5 = vector.shape_cast %4 : vector<1x8x512xbf16> to vector<8x512xbf16>
    %6 = arith.extf %5 : vector<8x512xbf16> to vector<8x512xf32>
    %c0_3 = arith.constant 0 : index
    %c0_4 = arith.constant 0 : index
    %7 = vector.load %arg3[%c0_3, %c0_4] : memref<128x512xbf16, #tpu.memory_space<vmem>>, vector<128x512xbf16>
    %cst_5 = arith.constant dense<0.000000e+00> : vector<8x512xf32>
    %8 = tpu.matmul %1, %7, %cst_5 {dimension_numbers = #tpu.dot_dimension_numbers<[1], [0], [0], [1], [0, 0, 1, 1], [], []>} : vector<8x128xbf16>, vector<128x512xbf16>, vector<8x512xf32> -> vector<8x512xf32>
    %9 = arith.addf %6, %8 : vector<8x512xf32>
    %10 = vector.extract_strided_slice %9 {offsets = [0, 0], sizes = [8, 128], strides = [1, 1]} : vector<8x512xf32> to vector<8x128xf32>
    %cst_6 = arith.constant 5.000000e-01 : f32
    %11 = vector.broadcast %cst_6 : f32 to vector<8x128xf32>
    %12 = arith.mulf %11, %10 : vector<8x128xf32>
    %13 = math.tanh %12 : vector<8x128xf32>
    %cst_7 = arith.constant 5.000000e-01 : f32
    %14 = vector.broadcast %cst_7 : f32 to vector<8x128xf32>
    %15 = arith.mulf %14, %13 : vector<8x128xf32>
    %cst_8 = arith.constant 5.000000e-01 : f32
    %16 = vector.broadcast %cst_8 : f32 to vector<8x128xf32>
    %17 = arith.addf %15, %16 : vector<8x128xf32>
    %18 = vector.extract_strided_slice %9 {offsets = [0, 128], sizes = [8, 128], strides = [1, 1]} : vector<8x512xf32> to vector<8x128xf32>
    %cst_9 = arith.constant 5.000000e-01 : f32
    %19 = vector.broadcast %cst_9 : f32 to vector<8x128xf32>
    %20 = arith.mulf %19, %18 : vector<8x128xf32>
    %21 = math.tanh %20 : vector<8x128xf32>
    %cst_10 = arith.constant 5.000000e-01 : f32
    %22 = vector.broadcast %cst_10 : f32 to vector<8x128xf32>
    %23 = arith.mulf %22, %21 : vector<8x128xf32>
    %cst_11 = arith.constant 5.000000e-01 : f32
    %24 = vector.broadcast %cst_11 : f32 to vector<8x128xf32>
    %25 = arith.addf %23, %24 : vector<8x128xf32>
    %26 = vector.extract_strided_slice %9 {offsets = [0, 256], sizes = [8, 128], strides = [1, 1]} : vector<8x512xf32> to vector<8x128xf32>
    %27 = math.tanh %26 : vector<8x128xf32>
    %28 = vector.extract_strided_slice %9 {offsets = [0, 384], sizes = [8, 128], strides = [1, 1]} : vector<8x512xf32> to vector<8x128xf32>
    %cst_12 = arith.constant 5.000000e-01 : f32
    %29 = vector.broadcast %cst_12 : f32 to vector<8x128xf32>
    %30 = arith.mulf %29, %28 : vector<8x128xf32>
    %31 = math.tanh %30 : vector<8x128xf32>
    %cst_13 = arith.constant 5.000000e-01 : f32
    %32 = vector.broadcast %cst_13 : f32 to vector<8x128xf32>
    %33 = arith.mulf %32, %31 : vector<8x128xf32>
    %cst_14 = arith.constant 5.000000e-01 : f32
    %34 = vector.broadcast %cst_14 : f32 to vector<8x128xf32>
    %35 = arith.addf %33, %34 : vector<8x128xf32>
    %36 = arith.mulf %25, %2 : vector<8x128xf32>
    %37 = arith.mulf %17, %27 : vector<8x128xf32>
    %38 = arith.addf %36, %37 : vector<8x128xf32>
    %39 = math.tanh %38 : vector<8x128xf32>
    %40 = arith.mulf %35, %39 : vector<8x128xf32>
    %c0_15 = arith.constant 0 : index
    %c0_16 = arith.constant 0 : index
    %41 = vector.load %arg1[%c0_15, %c0_16] : memref<8x128xi32, #tpu.memory_space<vmem>>, vector<8x128xi32>
    %42 = vector.broadcast %c0_i32 : i32 to vector<8x128xi32>
    %43 = arith.cmpi slt, %42, %41 : vector<8x128xi32>
    %44 = arith.select %43, %40, %0 : vector<8x128xi1>, vector<8x128xf32>
    %45 = arith.truncf %44 : vector<8x128xf32> to vector<8x128xbf16>
    %c1_i32 = arith.constant 1 : i32
    %46 = arith.index_cast %c1_i32 : i32 to index
    %c0_17 = arith.constant 0 : index
    %c0_18 = arith.constant 0 : index
    %47 = vector.load %arg2[%46, %c0_17, %c0_18] : memref<8x8x512xbf16, #tpu.memory_space<vmem>>, vector<1x8x512xbf16>
    %48 = vector.shape_cast %47 : vector<1x8x512xbf16> to vector<8x512xbf16>
    %49 = arith.extf %48 : vector<8x512xbf16> to vector<8x512xf32>
    %c0_19 = arith.constant 0 : index
    %c0_20 = arith.constant 0 : index
    %50 = vector.load %arg3[%c0_19, %c0_20] : memref<128x512xbf16, #tpu.memory_space<vmem>>, vector<128x512xbf16>
    %cst_21 = arith.constant dense<0.000000e+00> : vector<8x512xf32>
    %51 = tpu.matmul %45, %50, %cst_21 {dimension_numbers = #tpu.dot_dimension_numbers<[1], [0], [0], [1], [0, 0, 1, 1], [], []>} : vector<8x128xbf16>, vector<128x512xbf16>, vector<8x512xf32> -> vector<8x512xf32>
    %52 = arith.addf %49, %51 : vector<8x512xf32>
    %53 = vector.extract_strided_slice %52 {offsets = [0, 0], sizes = [8, 128], strides = [1, 1]} : vector<8x512xf32> to vector<8x128xf32>
    %cst_22 = arith.constant 5.000000e-01 : f32
    %54 = vector.broadcast %cst_22 : f32 to vector<8x128xf32>
    %55 = arith.mulf %54, %53 : vector<8x128xf32>
    %56 = math.tanh %55 : vector<8x128xf32>
    %cst_23 = arith.constant 5.000000e-01 : f32
    %57 = vector.broadcast %cst_23 : f32 to vector<8x128xf32>
    %58 = arith.mulf %57, %56 : vector<8x128xf32>
    %cst_24 = arith.constant 5.000000e-01 : f32
    %59 = vector.broadcast %cst_24 : f32 to vector<8x128xf32>
    %60 = arith.addf %58, %59 : vector<8x128xf32>
    %61 = vector.extract_strided_slice %52 {offsets = [0, 128], sizes = [8, 128], strides = [1, 1]} : vector<8x512xf32> to vector<8x128xf32>
    %cst_25 = arith.constant 5.000000e-01 : f32
    %62 = vector.broadcast %cst_25 : f32 to vector<8x128xf32>
    %63 = arith.mulf %62, %61 : vector<8x128xf32>
    %64 = math.tanh %63 : vector<8x128xf32>
    %cst_26 = arith.constant 5.000000e-01 : f32
    %65 = vector.broadcast %cst_26 : f32 to vector<8x128xf32>
    %66 = arith.mulf %65, %64 : vector<8x128xf32>
    %cst_27 = arith.constant 5.000000e-01 : f32
    %67 = vector.broadcast %cst_27 : f32 to vector<8x128xf32>
    %68 = arith.addf %66, %67 : vector<8x128xf32>
    %69 = vector.extract_strided_slice %52 {offsets = [0, 256], sizes = [8, 128], strides = [1, 1]} : vector<8x512xf32> to vector<8x128xf32>
    %70 = math.tanh %69 : vector<8x128xf32>
    %71 = vector.extract_strided_slice %52 {offsets = [0, 384], sizes = [8, 128], strides = [1, 1]} : vector<8x512xf32> to vector<8x128xf32>
    %cst_28 = arith.constant 5.000000e-01 : f32
    %72 = vector.broadcast %cst_28 : f32 to vector<8x128xf32>
    %73 = arith.mulf %72, %71 : vector<8x128xf32>
    %74 = math.tanh %73 : vector<8x128xf32>
    %cst_29 = arith.constant 5.000000e-01 : f32
    %75 = vector.broadcast %cst_29 : f32 to vector<8x128xf32>
    %76 = arith.mulf %75, %74 : vector<8x128xf32>
    %cst_30 = arith.constant 5.000000e-01 : f32
    %77 = vector.broadcast %cst_30 : f32 to vector<8x128xf32>
    %78 = arith.addf %76, %77 : vector<8x128xf32>
    %79 = arith.mulf %68, %38 : vector<8x128xf32>
    %80 = arith.mulf %60, %70 : vector<8x128xf32>
    %81 = arith.addf %79, %80 : vector<8x128xf32>
    %82 = math.tanh %81 : vector<8x128xf32>
    %83 = arith.mulf %78, %82 : vector<8x128xf32>
    %c0_31 = arith.constant 0 : index
    %c0_32 = arith.constant 0 : index
    %84 = vector.load %arg1[%c0_31, %c0_32] : memref<8x128xi32, #tpu.memory_space<vmem>>, vector<8x128xi32>
    %85 = vector.broadcast %c1_i32 : i32 to vector<8x128xi32>
    %86 = arith.cmpi slt, %85, %84 : vector<8x128xi32>
    %87 = arith.select %86, %83, %44 : vector<8x128xi1>, vector<8x128xf32>
    %88 = arith.truncf %87 : vector<8x128xf32> to vector<8x128xbf16>
    %c2_i32 = arith.constant 2 : i32
    %89 = arith.index_cast %c2_i32 : i32 to index
    %c0_33 = arith.constant 0 : index
    %c0_34 = arith.constant 0 : index
    %90 = vector.load %arg2[%89, %c0_33, %c0_34] : memref<8x8x512xbf16, #tpu.memory_space<vmem>>, vector<1x8x512xbf16>
    %91 = vector.shape_cast %90 : vector<1x8x512xbf16> to vector<8x512xbf16>
    %92 = arith.extf %91 : vector<8x512xbf16> to vector<8x512xf32>
    %c0_35 = arith.constant 0 : index
    %c0_36 = arith.constant 0 : index
    %93 = vector.load %arg3[%c0_35, %c0_36] : memref<128x512xbf16, #tpu.memory_space<vmem>>, vector<128x512xbf16>
    %cst_37 = arith.constant dense<0.000000e+00> : vector<8x512xf32>
    %94 = tpu.matmul %88, %93, %cst_37 {dimension_numbers = #tpu.dot_dimension_numbers<[1], [0], [0], [1], [0, 0, 1, 1], [], []>} : vector<8x128xbf16>, vector<128x512xbf16>, vector<8x512xf32> -> vector<8x512xf32>
    %95 = arith.addf %92, %94 : vector<8x512xf32>
    %96 = vector.extract_strided_slice %95 {offsets = [0, 0], sizes = [8, 128], strides = [1, 1]} : vector<8x512xf32> to vector<8x128xf32>
    %cst_38 = arith.constant 5.000000e-01 : f32
    %97 = vector.broadcast %cst_38 : f32 to vector<8x128xf32>
    %98 = arith.mulf %97, %96 : vector<8x128xf32>
    %99 = math.tanh %98 : vector<8x128xf32>
    %cst_39 = arith.constant 5.000000e-01 : f32
    %100 = vector.broadcast %cst_39 : f32 to vector<8x128xf32>
    %101 = arith.mulf %100, %99 : vector<8x128xf32>
    %cst_40 = arith.constant 5.000000e-01 : f32
    %102 = vector.broadcast %cst_40 : f32 to vector<8x128xf32>
    %103 = arith.addf %101, %102 : vector<8x128xf32>
    %104 = vector.extract_strided_slice %95 {offsets = [0, 128], sizes = [8, 128], strides = [1, 1]} : vector<8x512xf32> to vector<8x128xf32>
    %cst_41 = arith.constant 5.000000e-01 : f32
    %105 = vector.broadcast %cst_41 : f32 to vector<8x128xf32>
    %106 = arith.mulf %105, %104 : vector<8x128xf32>
    %107 = math.tanh %106 : vector<8x128xf32>
    %cst_42 = arith.constant 5.000000e-01 : f32
    %108 = vector.broadcast %cst_42 : f32 to vector<8x128xf32>
    %109 = arith.mulf %108, %107 : vector<8x128xf32>
    %cst_43 = arith.constant 5.000000e-01 : f32
    %110 = vector.broadcast %cst_43 : f32 to vector<8x128xf32>
    %111 = arith.addf %109, %110 : vector<8x128xf32>
    %112 = vector.extract_strided_slice %95 {offsets = [0, 256], sizes = [8, 128], strides = [1, 1]} : vector<8x512xf32> to vector<8x128xf32>
    %113 = math.tanh %112 : vector<8x128xf32>
    %114 = vector.extract_strided_slice %95 {offsets = [0, 384], sizes = [8, 128], strides = [1, 1]} : vector<8x512xf32> to vector<8x128xf32>
    %cst_44 = arith.constant 5.000000e-01 : f32
    %115 = vector.broadcast %cst_44 : f32 to vector<8x128xf32>
    %116 = arith.mulf %115, %114 : vector<8x128xf32>
    %117 = math.tanh %116 : vector<8x128xf32>
    %cst_45 = arith.constant 5.000000e-01 : f32
    %118 = vector.broadcast %cst_45 : f32 to vector<8x128xf32>
    %119 = arith.mulf %118, %117 : vector<8x128xf32>
    %cst_46 = arith.constant 5.000000e-01 : f32
    %120 = vector.broadcast %cst_46 : f32 to vector<8x128xf32>
    %121 = arith.addf %119, %120 : vector<8x128xf32>
    %122 = arith.mulf %111, %81 : vector<8x128xf32>
    %123 = arith.mulf %103, %113 : vector<8x128xf32>
    %124 = arith.addf %122, %123 : vector<8x128xf32>
    %125 = math.tanh %124 : vector<8x128xf32>
    %126 = arith.mulf %121, %125 : vector<8x128xf32>
    %c0_47 = arith.constant 0 : index
    %c0_48 = arith.constant 0 : index
    %127 = vector.load %arg1[%c0_47, %c0_48] : memref<8x128xi32, #tpu.memory_space<vmem>>, vector<8x128xi32>
    %128 = vector.broadcast %c2_i32 : i32 to vector<8x128xi32>
    %129 = arith.cmpi slt, %128, %127 : vector<8x128xi32>
    %130 = arith.select %129, %126, %87 : vector<8x128xi1>, vector<8x128xf32>
    %131 = arith.truncf %130 : vector<8x128xf32> to vector<8x128xbf16>
    %c3_i32 = arith.constant 3 : i32
    %132 = arith.index_cast %c3_i32 : i32 to index
    %c0_49 = arith.constant 0 : index
    %c0_50 = arith.constant 0 : index
    %133 = vector.load %arg2[%132, %c0_49, %c0_50] : memref<8x8x512xbf16, #tpu.memory_space<vmem>>, vector<1x8x512xbf16>
    %134 = vector.shape_cast %133 : vector<1x8x512xbf16> to vector<8x512xbf16>
    %135 = arith.extf %134 : vector<8x512xbf16> to vector<8x512xf32>
    %c0_51 = arith.constant 0 : index
    %c0_52 = arith.constant 0 : index
    %136 = vector.load %arg3[%c0_51, %c0_52] : memref<128x512xbf16, #tpu.memory_space<vmem>>, vector<128x512xbf16>
    %cst_53 = arith.constant dense<0.000000e+00> : vector<8x512xf32>
    %137 = tpu.matmul %131, %136, %cst_53 {dimension_numbers = #tpu.dot_dimension_numbers<[1], [0], [0], [1], [0, 0, 1, 1], [], []>} : vector<8x128xbf16>, vector<128x512xbf16>, vector<8x512xf32> -> vector<8x512xf32>
    %138 = arith.addf %135, %137 : vector<8x512xf32>
    %139 = vector.extract_strided_slice %138 {offsets = [0, 0], sizes = [8, 128], strides = [1, 1]} : vector<8x512xf32> to vector<8x128xf32>
    %cst_54 = arith.constant 5.000000e-01 : f32
    %140 = vector.broadcast %cst_54 : f32 to vector<8x128xf32>
    %141 = arith.mulf %140, %139 : vector<8x128xf32>
    %142 = math.tanh %141 : vector<8x128xf32>
    %cst_55 = arith.constant 5.000000e-01 : f32
    %143 = vector.broadcast %cst_55 : f32 to vector<8x128xf32>
    %144 = arith.mulf %143, %142 : vector<8x128xf32>
    %cst_56 = arith.constant 5.000000e-01 : f32
    %145 = vector.broadcast %cst_56 : f32 to vector<8x128xf32>
    %146 = arith.addf %144, %145 : vector<8x128xf32>
    %147 = vector.extract_strided_slice %138 {offsets = [0, 128], sizes = [8, 128], strides = [1, 1]} : vector<8x512xf32> to vector<8x128xf32>
    %cst_57 = arith.constant 5.000000e-01 : f32
    %148 = vector.broadcast %cst_57 : f32 to vector<8x128xf32>
    %149 = arith.mulf %148, %147 : vector<8x128xf32>
    %150 = math.tanh %149 : vector<8x128xf32>
    %cst_58 = arith.constant 5.000000e-01 : f32
    %151 = vector.broadcast %cst_58 : f32 to vector<8x128xf32>
    %152 = arith.mulf %151, %150 : vector<8x128xf32>
    %cst_59 = arith.constant 5.000000e-01 : f32
    %153 = vector.broadcast %cst_59 : f32 to vector<8x128xf32>
    %154 = arith.addf %152, %153 : vector<8x128xf32>
    %155 = vector.extract_strided_slice %138 {offsets = [0, 256], sizes = [8, 128], strides = [1, 1]} : vector<8x512xf32> to vector<8x128xf32>
    %156 = math.tanh %155 : vector<8x128xf32>
    %157 = vector.extract_strided_slice %138 {offsets = [0, 384], sizes = [8, 128], strides = [1, 1]} : vector<8x512xf32> to vector<8x128xf32>
    %cst_60 = arith.constant 5.000000e-01 : f32
    %158 = vector.broadcast %cst_60 : f32 to vector<8x128xf32>
    %159 = arith.mulf %158, %157 : vector<8x128xf32>
    %160 = math.tanh %159 : vector<8x128xf32>
    %cst_61 = arith.constant 5.000000e-01 : f32
    %161 = vector.broadcast %cst_61 : f32 to vector<8x128xf32>
    %162 = arith.mulf %161, %160 : vector<8x128xf32>
    %cst_62 = arith.constant 5.000000e-01 : f32
    %163 = vector.broadcast %cst_62 : f32 to vector<8x128xf32>
    %164 = arith.addf %162, %163 : vector<8x128xf32>
    %165 = arith.mulf %154, %124 : vector<8x128xf32>
    %166 = arith.mulf %146, %156 : vector<8x128xf32>
    %167 = arith.addf %165, %166 : vector<8x128xf32>
    %168 = math.tanh %167 : vector<8x128xf32>
    %169 = arith.mulf %164, %168 : vector<8x128xf32>
    %c0_63 = arith.constant 0 : index
    %c0_64 = arith.constant 0 : index
    %170 = vector.load %arg1[%c0_63, %c0_64] : memref<8x128xi32, #tpu.memory_space<vmem>>, vector<8x128xi32>
    %171 = vector.broadcast %c3_i32 : i32 to vector<8x128xi32>
    %172 = arith.cmpi slt, %171, %170 : vector<8x128xi32>
    %173 = arith.select %172, %169, %130 : vector<8x128xi1>, vector<8x128xf32>
    %174 = arith.truncf %173 : vector<8x128xf32> to vector<8x128xbf16>
    %c4_i32 = arith.constant 4 : i32
    %175 = arith.index_cast %c4_i32 : i32 to index
    %c0_65 = arith.constant 0 : index
    %c0_66 = arith.constant 0 : index
    %176 = vector.load %arg2[%175, %c0_65, %c0_66] : memref<8x8x512xbf16, #tpu.memory_space<vmem>>, vector<1x8x512xbf16>
    %177 = vector.shape_cast %176 : vector<1x8x512xbf16> to vector<8x512xbf16>
    %178 = arith.extf %177 : vector<8x512xbf16> to vector<8x512xf32>
    %c0_67 = arith.constant 0 : index
    %c0_68 = arith.constant 0 : index
    %179 = vector.load %arg3[%c0_67, %c0_68] : memref<128x512xbf16, #tpu.memory_space<vmem>>, vector<128x512xbf16>
    %cst_69 = arith.constant dense<0.000000e+00> : vector<8x512xf32>
    %180 = tpu.matmul %174, %179, %cst_69 {dimension_numbers = #tpu.dot_dimension_numbers<[1], [0], [0], [1], [0, 0, 1, 1], [], []>} : vector<8x128xbf16>, vector<128x512xbf16>, vector<8x512xf32> -> vector<8x512xf32>
    %181 = arith.addf %178, %180 : vector<8x512xf32>
    %182 = vector.extract_strided_slice %181 {offsets = [0, 0], sizes = [8, 128], strides = [1, 1]} : vector<8x512xf32> to vector<8x128xf32>
    %cst_70 = arith.constant 5.000000e-01 : f32
    %183 = vector.broadcast %cst_70 : f32 to vector<8x128xf32>
    %184 = arith.mulf %183, %182 : vector<8x128xf32>
    %185 = math.tanh %184 : vector<8x128xf32>
    %cst_71 = arith.constant 5.000000e-01 : f32
    %186 = vector.broadcast %cst_71 : f32 to vector<8x128xf32>
    %187 = arith.mulf %186, %185 : vector<8x128xf32>
    %cst_72 = arith.constant 5.000000e-01 : f32
    %188 = vector.broadcast %cst_72 : f32 to vector<8x128xf32>
    %189 = arith.addf %187, %188 : vector<8x128xf32>
    %190 = vector.extract_strided_slice %181 {offsets = [0, 128], sizes = [8, 128], strides = [1, 1]} : vector<8x512xf32> to vector<8x128xf32>
    %cst_73 = arith.constant 5.000000e-01 : f32
    %191 = vector.broadcast %cst_73 : f32 to vector<8x128xf32>
    %192 = arith.mulf %191, %190 : vector<8x128xf32>
    %193 = math.tanh %192 : vector<8x128xf32>
    %cst_74 = arith.constant 5.000000e-01 : f32
    %194 = vector.broadcast %cst_74 : f32 to vector<8x128xf32>
    %195 = arith.mulf %194, %193 : vector<8x128xf32>
    %cst_75 = arith.constant 5.000000e-01 : f32
    %196 = vector.broadcast %cst_75 : f32 to vector<8x128xf32>
    %197 = arith.addf %195, %196 : vector<8x128xf32>
    %198 = vector.extract_strided_slice %181 {offsets = [0, 256], sizes = [8, 128], strides = [1, 1]} : vector<8x512xf32> to vector<8x128xf32>
    %199 = math.tanh %198 : vector<8x128xf32>
    %200 = vector.extract_strided_slice %181 {offsets = [0, 384], sizes = [8, 128], strides = [1, 1]} : vector<8x512xf32> to vector<8x128xf32>
    %cst_76 = arith.constant 5.000000e-01 : f32
    %201 = vector.broadcast %cst_76 : f32 to vector<8x128xf32>
    %202 = arith.mulf %201, %200 : vector<8x128xf32>
    %203 = math.tanh %202 : vector<8x128xf32>
    %cst_77 = arith.constant 5.000000e-01 : f32
    %204 = vector.broadcast %cst_77 : f32 to vector<8x128xf32>
    %205 = arith.mulf %204, %203 : vector<8x128xf32>
    %cst_78 = arith.constant 5.000000e-01 : f32
    %206 = vector.broadcast %cst_78 : f32 to vector<8x128xf32>
    %207 = arith.addf %205, %206 : vector<8x128xf32>
    %208 = arith.mulf %197, %167 : vector<8x128xf32>
    %209 = arith.mulf %189, %199 : vector<8x128xf32>
    %210 = arith.addf %208, %209 : vector<8x128xf32>
    %211 = math.tanh %210 : vector<8x128xf32>
    %212 = arith.mulf %207, %211 : vector<8x128xf32>
    %c0_79 = arith.constant 0 : index
    %c0_80 = arith.constant 0 : index
    %213 = vector.load %arg1[%c0_79, %c0_80] : memref<8x128xi32, #tpu.memory_space<vmem>>, vector<8x128xi32>
    %214 = vector.broadcast %c4_i32 : i32 to vector<8x128xi32>
    %215 = arith.cmpi slt, %214, %213 : vector<8x128xi32>
    %216 = arith.select %215, %212, %173 : vector<8x128xi1>, vector<8x128xf32>
    %217 = arith.truncf %216 : vector<8x128xf32> to vector<8x128xbf16>
    %c5_i32 = arith.constant 5 : i32
    %218 = arith.index_cast %c5_i32 : i32 to index
    %c0_81 = arith.constant 0 : index
    %c0_82 = arith.constant 0 : index
    %219 = vector.load %arg2[%218, %c0_81, %c0_82] : memref<8x8x512xbf16, #tpu.memory_space<vmem>>, vector<1x8x512xbf16>
    %220 = vector.shape_cast %219 : vector<1x8x512xbf16> to vector<8x512xbf16>
    %221 = arith.extf %220 : vector<8x512xbf16> to vector<8x512xf32>
    %c0_83 = arith.constant 0 : index
    %c0_84 = arith.constant 0 : index
    %222 = vector.load %arg3[%c0_83, %c0_84] : memref<128x512xbf16, #tpu.memory_space<vmem>>, vector<128x512xbf16>
    %cst_85 = arith.constant dense<0.000000e+00> : vector<8x512xf32>
    %223 = tpu.matmul %217, %222, %cst_85 {dimension_numbers = #tpu.dot_dimension_numbers<[1], [0], [0], [1], [0, 0, 1, 1], [], []>} : vector<8x128xbf16>, vector<128x512xbf16>, vector<8x512xf32> -> vector<8x512xf32>
    %224 = arith.addf %221, %223 : vector<8x512xf32>
    %225 = vector.extract_strided_slice %224 {offsets = [0, 0], sizes = [8, 128], strides = [1, 1]} : vector<8x512xf32> to vector<8x128xf32>
    %cst_86 = arith.constant 5.000000e-01 : f32
    %226 = vector.broadcast %cst_86 : f32 to vector<8x128xf32>
    %227 = arith.mulf %226, %225 : vector<8x128xf32>
    %228 = math.tanh %227 : vector<8x128xf32>
    %cst_87 = arith.constant 5.000000e-01 : f32
    %229 = vector.broadcast %cst_87 : f32 to vector<8x128xf32>
    %230 = arith.mulf %229, %228 : vector<8x128xf32>
    %cst_88 = arith.constant 5.000000e-01 : f32
    %231 = vector.broadcast %cst_88 : f32 to vector<8x128xf32>
    %232 = arith.addf %230, %231 : vector<8x128xf32>
    %233 = vector.extract_strided_slice %224 {offsets = [0, 128], sizes = [8, 128], strides = [1, 1]} : vector<8x512xf32> to vector<8x128xf32>
    %cst_89 = arith.constant 5.000000e-01 : f32
    %234 = vector.broadcast %cst_89 : f32 to vector<8x128xf32>
    %235 = arith.mulf %234, %233 : vector<8x128xf32>
    %236 = math.tanh %235 : vector<8x128xf32>
    %cst_90 = arith.constant 5.000000e-01 : f32
    %237 = vector.broadcast %cst_90 : f32 to vector<8x128xf32>
    %238 = arith.mulf %237, %236 : vector<8x128xf32>
    %cst_91 = arith.constant 5.000000e-01 : f32
    %239 = vector.broadcast %cst_91 : f32 to vector<8x128xf32>
    %240 = arith.addf %238, %239 : vector<8x128xf32>
    %241 = vector.extract_strided_slice %224 {offsets = [0, 256], sizes = [8, 128], strides = [1, 1]} : vector<8x512xf32> to vector<8x128xf32>
    %242 = math.tanh %241 : vector<8x128xf32>
    %243 = vector.extract_strided_slice %224 {offsets = [0, 384], sizes = [8, 128], strides = [1, 1]} : vector<8x512xf32> to vector<8x128xf32>
    %cst_92 = arith.constant 5.000000e-01 : f32
    %244 = vector.broadcast %cst_92 : f32 to vector<8x128xf32>
    %245 = arith.mulf %244, %243 : vector<8x128xf32>
    %246 = math.tanh %245 : vector<8x128xf32>
    %cst_93 = arith.constant 5.000000e-01 : f32
    %247 = vector.broadcast %cst_93 : f32 to vector<8x128xf32>
    %248 = arith.mulf %247, %246 : vector<8x128xf32>
    %cst_94 = arith.constant 5.000000e-01 : f32
    %249 = vector.broadcast %cst_94 : f32 to vector<8x128xf32>
    %250 = arith.addf %248, %249 : vector<8x128xf32>
    %251 = arith.mulf %240, %210 : vector<8x128xf32>
    %252 = arith.mulf %232, %242 : vector<8x128xf32>
    %253 = arith.addf %251, %252 : vector<8x128xf32>
    %254 = math.tanh %253 : vector<8x128xf32>
    %255 = arith.mulf %250, %254 : vector<8x128xf32>
    %c0_95 = arith.constant 0 : index
    %c0_96 = arith.constant 0 : index
    %256 = vector.load %arg1[%c0_95, %c0_96] : memref<8x128xi32, #tpu.memory_space<vmem>>, vector<8x128xi32>
    %257 = vector.broadcast %c5_i32 : i32 to vector<8x128xi32>
    %258 = arith.cmpi slt, %257, %256 : vector<8x128xi32>
    %259 = arith.select %258, %255, %216 : vector<8x128xi1>, vector<8x128xf32>
    %260 = arith.truncf %259 : vector<8x128xf32> to vector<8x128xbf16>
    %c6_i32 = arith.constant 6 : i32
    %261 = arith.index_cast %c6_i32 : i32 to index
    %c0_97 = arith.constant 0 : index
    %c0_98 = arith.constant 0 : index
    %262 = vector.load %arg2[%261, %c0_97, %c0_98] : memref<8x8x512xbf16, #tpu.memory_space<vmem>>, vector<1x8x512xbf16>
    %263 = vector.shape_cast %262 : vector<1x8x512xbf16> to vector<8x512xbf16>
    %264 = arith.extf %263 : vector<8x512xbf16> to vector<8x512xf32>
    %c0_99 = arith.constant 0 : index
    %c0_100 = arith.constant 0 : index
    %265 = vector.load %arg3[%c0_99, %c0_100] : memref<128x512xbf16, #tpu.memory_space<vmem>>, vector<128x512xbf16>
    %cst_101 = arith.constant dense<0.000000e+00> : vector<8x512xf32>
    %266 = tpu.matmul %260, %265, %cst_101 {dimension_numbers = #tpu.dot_dimension_numbers<[1], [0], [0], [1], [0, 0, 1, 1], [], []>} : vector<8x128xbf16>, vector<128x512xbf16>, vector<8x512xf32> -> vector<8x512xf32>
    %267 = arith.addf %264, %266 : vector<8x512xf32>
    %268 = vector.extract_strided_slice %267 {offsets = [0, 0], sizes = [8, 128], strides = [1, 1]} : vector<8x512xf32> to vector<8x128xf32>
    %cst_102 = arith.constant 5.000000e-01 : f32
    %269 = vector.broadcast %cst_102 : f32 to vector<8x128xf32>
    %270 = arith.mulf %269, %268 : vector<8x128xf32>
    %271 = math.tanh %270 : vector<8x128xf32>
    %cst_103 = arith.constant 5.000000e-01 : f32
    %272 = vector.broadcast %cst_103 : f32 to vector<8x128xf32>
    %273 = arith.mulf %272, %271 : vector<8x128xf32>
    %cst_104 = arith.constant 5.000000e-01 : f32
    %274 = vector.broadcast %cst_104 : f32 to vector<8x128xf32>
    %275 = arith.addf %273, %274 : vector<8x128xf32>
    %276 = vector.extract_strided_slice %267 {offsets = [0, 128], sizes = [8, 128], strides = [1, 1]} : vector<8x512xf32> to vector<8x128xf32>
    %cst_105 = arith.constant 5.000000e-01 : f32
    %277 = vector.broadcast %cst_105 : f32 to vector<8x128xf32>
    %278 = arith.mulf %277, %276 : vector<8x128xf32>
    %279 = math.tanh %278 : vector<8x128xf32>
    %cst_106 = arith.constant 5.000000e-01 : f32
    %280 = vector.broadcast %cst_106 : f32 to vector<8x128xf32>
    %281 = arith.mulf %280, %279 : vector<8x128xf32>
    %cst_107 = arith.constant 5.000000e-01 : f32
    %282 = vector.broadcast %cst_107 : f32 to vector<8x128xf32>
    %283 = arith.addf %281, %282 : vector<8x128xf32>
    %284 = vector.extract_strided_slice %267 {offsets = [0, 256], sizes = [8, 128], strides = [1, 1]} : vector<8x512xf32> to vector<8x128xf32>
    %285 = math.tanh %284 : vector<8x128xf32>
    %286 = vector.extract_strided_slice %267 {offsets = [0, 384], sizes = [8, 128], strides = [1, 1]} : vector<8x512xf32> to vector<8x128xf32>
    %cst_108 = arith.constant 5.000000e-01 : f32
    %287 = vector.broadcast %cst_108 : f32 to vector<8x128xf32>
    %288 = arith.mulf %287, %286 : vector<8x128xf32>
    %289 = math.tanh %288 : vector<8x128xf32>
    %cst_109 = arith.constant 5.000000e-01 : f32
    %290 = vector.broadcast %cst_109 : f32 to vector<8x128xf32>
    %291 = arith.mulf %290, %289 : vector<8x128xf32>
    %cst_110 = arith.constant 5.000000e-01 : f32
    %292 = vector.broadcast %cst_110 : f32 to vector<8x128xf32>
    %293 = arith.addf %291, %292 : vector<8x128xf32>
    %294 = arith.mulf %283, %253 : vector<8x128xf32>
    %295 = arith.mulf %275, %285 : vector<8x128xf32>
    %296 = arith.addf %294, %295 : vector<8x128xf32>
    %297 = math.tanh %296 : vector<8x128xf32>
    %298 = arith.mulf %293, %297 : vector<8x128xf32>
    %c0_111 = arith.constant 0 : index
    %c0_112 = arith.constant 0 : index
    %299 = vector.load %arg1[%c0_111, %c0_112] : memref<8x128xi32, #tpu.memory_space<vmem>>, vector<8x128xi32>
    %300 = vector.broadcast %c6_i32 : i32 to vector<8x128xi32>
    %301 = arith.cmpi slt, %300, %299 : vector<8x128xi32>
    %302 = arith.select %301, %298, %259 : vector<8x128xi1>, vector<8x128xf32>
    %303 = arith.truncf %302 : vector<8x128xf32> to vector<8x128xbf16>
    %c7_i32 = arith.constant 7 : i32
    %304 = arith.index_cast %c7_i32 : i32 to index
    %c0_113 = arith.constant 0 : index
    %c0_114 = arith.constant 0 : index
    %305 = vector.load %arg2[%304, %c0_113, %c0_114] : memref<8x8x512xbf16, #tpu.memory_space<vmem>>, vector<1x8x512xbf16>
    %306 = vector.shape_cast %305 : vector<1x8x512xbf16> to vector<8x512xbf16>
    %307 = arith.extf %306 : vector<8x512xbf16> to vector<8x512xf32>
    %c0_115 = arith.constant 0 : index
    %c0_116 = arith.constant 0 : index
    %308 = vector.load %arg3[%c0_115, %c0_116] : memref<128x512xbf16, #tpu.memory_space<vmem>>, vector<128x512xbf16>
    %cst_117 = arith.constant dense<0.000000e+00> : vector<8x512xf32>
    %309 = tpu.matmul %303, %308, %cst_117 {dimension_numbers = #tpu.dot_dimension_numbers<[1], [0], [0], [1], [0, 0, 1, 1], [], []>} : vector<8x128xbf16>, vector<128x512xbf16>, vector<8x512xf32> -> vector<8x512xf32>
    %310 = arith.addf %307, %309 : vector<8x512xf32>
    %311 = vector.extract_strided_slice %310 {offsets = [0, 0], sizes = [8, 128], strides = [1, 1]} : vector<8x512xf32> to vector<8x128xf32>
    %cst_118 = arith.constant 5.000000e-01 : f32
    %312 = vector.broadcast %cst_118 : f32 to vector<8x128xf32>
    %313 = arith.mulf %312, %311 : vector<8x128xf32>
    %314 = math.tanh %313 : vector<8x128xf32>
    %cst_119 = arith.constant 5.000000e-01 : f32
    %315 = vector.broadcast %cst_119 : f32 to vector<8x128xf32>
    %316 = arith.mulf %315, %314 : vector<8x128xf32>
    %cst_120 = arith.constant 5.000000e-01 : f32
    %317 = vector.broadcast %cst_120 : f32 to vector<8x128xf32>
    %318 = arith.addf %316, %317 : vector<8x128xf32>
    %319 = vector.extract_strided_slice %310 {offsets = [0, 128], sizes = [8, 128], strides = [1, 1]} : vector<8x512xf32> to vector<8x128xf32>
    %cst_121 = arith.constant 5.000000e-01 : f32
    %320 = vector.broadcast %cst_121 : f32 to vector<8x128xf32>
    %321 = arith.mulf %320, %319 : vector<8x128xf32>
    %322 = math.tanh %321 : vector<8x128xf32>
    %cst_122 = arith.constant 5.000000e-01 : f32
    %323 = vector.broadcast %cst_122 : f32 to vector<8x128xf32>
    %324 = arith.mulf %323, %322 : vector<8x128xf32>
    %cst_123 = arith.constant 5.000000e-01 : f32
    %325 = vector.broadcast %cst_123 : f32 to vector<8x128xf32>
    %326 = arith.addf %324, %325 : vector<8x128xf32>
    %327 = vector.extract_strided_slice %310 {offsets = [0, 256], sizes = [8, 128], strides = [1, 1]} : vector<8x512xf32> to vector<8x128xf32>
    %328 = math.tanh %327 : vector<8x128xf32>
    %329 = vector.extract_strided_slice %310 {offsets = [0, 384], sizes = [8, 128], strides = [1, 1]} : vector<8x512xf32> to vector<8x128xf32>
    %cst_124 = arith.constant 5.000000e-01 : f32
    %330 = vector.broadcast %cst_124 : f32 to vector<8x128xf32>
    %331 = arith.mulf %330, %329 : vector<8x128xf32>
    %332 = math.tanh %331 : vector<8x128xf32>
    %cst_125 = arith.constant 5.000000e-01 : f32
    %333 = vector.broadcast %cst_125 : f32 to vector<8x128xf32>
    %334 = arith.mulf %333, %332 : vector<8x128xf32>
    %cst_126 = arith.constant 5.000000e-01 : f32
    %335 = vector.broadcast %cst_126 : f32 to vector<8x128xf32>
    %336 = arith.addf %334, %335 : vector<8x128xf32>
    %337 = arith.mulf %326, %296 : vector<8x128xf32>
    %338 = arith.mulf %318, %328 : vector<8x128xf32>
    %339 = arith.addf %337, %338 : vector<8x128xf32>
    %340 = math.tanh %339 : vector<8x128xf32>
    %341 = arith.mulf %336, %340 : vector<8x128xf32>
    %c0_127 = arith.constant 0 : index
    %c0_128 = arith.constant 0 : index
    %342 = vector.load %arg1[%c0_127, %c0_128] : memref<8x128xi32, #tpu.memory_space<vmem>>, vector<8x128xi32>
    %343 = vector.broadcast %c7_i32 : i32 to vector<8x128xi32>
    %344 = arith.cmpi slt, %343, %342 : vector<8x128xi32>
    %345 = arith.select %344, %341, %302 : vector<8x128xi1>, vector<8x128xf32>
    %346 = arith.truncf %345 : vector<8x128xf32> to vector<8x128xbf16>
    %c8_i32 = arith.constant 8 : i32
    %347 = arith.truncf %345 : vector<8x128xf32> to vector<8x128xbf16>
    %c0_129 = arith.constant 0 : index
    %c0_130 = arith.constant 0 : index
    %348 = vector.load %arg4[%c0_129, %c0_130] : memref<128x128xbf16, #tpu.memory_space<vmem>>, vector<128x128xbf16>
    %cst_131 = arith.constant dense<0.000000e+00> : vector<8x128xf32>
    %349 = tpu.matmul %347, %348, %cst_131 {dimension_numbers = #tpu.dot_dimension_numbers<[1], [0], [0], [1], [0, 0, 1, 1], [], []>} : vector<8x128xbf16>, vector<128x128xbf16>, vector<8x128xf32> -> vector<8x128xf32>
    %c0_132 = arith.constant 0 : index
    %c0_133 = arith.constant 0 : index
    %350 = vector.load %arg5[%c0_132, %c0_133] : memref<1x128xf32, #tpu.memory_space<vmem>>, vector<1x128xf32>
    %351 = vector.broadcast %350 : vector<1x128xf32> to vector<8x128xf32>
    %352 = arith.addf %349, %351 : vector<8x128xf32>
    %cst_134 = arith.constant 0.000000e+00 : f32
    %353 = vector.broadcast %cst_134 : f32 to vector<8x128xf32>
    %354 = arith.maximumf %352, %353 : vector<8x128xf32>
    %355 = arith.truncf %354 : vector<8x128xf32> to vector<8x128xbf16>
    %c0_135 = arith.constant 0 : index
    %c0_136 = arith.constant 0 : index
    %356 = vector.load %arg6[%c0_135, %c0_136] : memref<128x128xbf16, #tpu.memory_space<vmem>>, vector<128x128xbf16>
    %cst_137 = arith.constant dense<0.000000e+00> : vector<8x128xf32>
    %357 = tpu.matmul %355, %356, %cst_137 {dimension_numbers = #tpu.dot_dimension_numbers<[1], [0], [0], [1], [0, 0, 1, 1], [], []>} : vector<8x128xbf16>, vector<128x128xbf16>, vector<8x128xf32> -> vector<8x128xf32>
    %c0_138 = arith.constant 0 : index
    %c0_139 = arith.constant 0 : index
    %358 = vector.load %arg7[%c0_138, %c0_139] : memref<1x128xf32, #tpu.memory_space<vmem>>, vector<1x128xf32>
    %359 = vector.broadcast %358 : vector<1x128xf32> to vector<8x128xf32>
    %360 = arith.addf %357, %359 : vector<8x128xf32>
    %c0_140 = arith.constant 0 : index
    %c0_141 = arith.constant 0 : index
    %361 = vector.load %arg8[%c0_140, %c0_141] : memref<8x128xf32, #tpu.memory_space<vmem>>, vector<8x128xf32>
    tpu.vector_store %arg8[%c0_140, %c0_141], %360 {strides = array<i32>} : memref<8x128xf32, #tpu.memory_space<vmem>>, vector<8x128xf32>,
    return
  }
  func.func @transform_0(%arg0: i32) -> (i32, i32) {
    %c0_i32 = arith.constant 0 : i32
    %c0_i32_0 = arith.constant 0 : i32
    return %arg0, %c0_i32 : i32, i32
  }
  func.func @transform_1(%arg0: i32) -> (i32, i32, i32) {
    %c0_i32 = arith.constant 0 : i32
    %c0_i32_0 = arith.constant 0 : i32
    %c0_i32_1 = arith.constant 0 : i32
    return %c0_i32, %arg0, %c0_i32_0 : i32, i32, i32
  }
  func.func @transform_2(%arg0: i32) -> (i32, i32) {
    %c0_i32 = arith.constant 0 : i32
    %c0_i32_0 = arith.constant 0 : i32
    %c0_i32_1 = arith.constant 0 : i32
    return %c0_i32, %c0_i32_0 : i32, i32
  }
  func.func @transform_3(%arg0: i32) -> (i32, i32) {
    %c0_i32 = arith.constant 0 : i32
    %c0_i32_0 = arith.constant 0 : i32
    %c0_i32_1 = arith.constant 0 : i32
    return %c0_i32, %c0_i32_0 : i32, i32
  }
  func.func @transform_4(%arg0: i32) -> (i32, i32) {
    %c0_i32 = arith.constant 0 : i32
    %c0_i32_0 = arith.constant 0 : i32
    %c0_i32_1 = arith.constant 0 : i32
    return %c0_i32, %c0_i32_0 : i32, i32
  }
  func.func @transform_5(%arg0: i32) -> (i32, i32) {
    %c0_i32 = arith.constant 0 : i32
    %c0_i32_0 = arith.constant 0 : i32
    %c0_i32_1 = arith.constant 0 : i32
    return %c0_i32, %c0_i32_0 : i32, i32
  }
  func.func @transform_6(%arg0: i32) -> (i32, i32) {
    %c0_i32 = arith.constant 0 : i32
    %c0_i32_0 = arith.constant 0 : i32
    %c0_i32_1 = arith.constant 0 : i32
    return %c0_i32, %c0_i32_0 : i32, i32
  }
  func.func @transform_7(%arg0: i32) -> (i32, i32) {
    %c0_i32 = arith.constant 0 : i32
    %c0_i32_0 = arith.constant 0 : i32
    return %arg0, %c0_i32 : i32, i32
  }
}

</mosaic_0001>

<bundles_post_ra>
// kernel: kprn_forward.1
= control target key start
LH: loop header
LB: loop body
LE: loop exit
PB: predicated region body
PF: predicated region fallthrough
CT: control target
= control target key end

     0   :  { %v1668_v1 = vmov 0   ;;  %vm1670_vm8 = vmmov 0   ;;  %s2415_s2 = inlined_call_operand.vmem [shape: bf16[128,512], index: 2, kind: input, shape index: {}]   ;;  %s2416_s1 = inlined_call_operand.vmem [shape: bf16[8,8,512], index: 1, kind: input, shape index: {}]   ;;  %s2417_s0 = inlined_call_operand.vmem [shape: s32[8,128], index: 0, kind: input, shape index: {}]   ;;  %s2418_s3 = inlined_call_operand.vmem [shape: bf16[128,128], index: 3, kind: input, shape index: {}]   ;;  %s2419_s5 = inlined_call_operand.vmem [shape: bf16[128,128], index: 5, kind: input, shape index: {}]   ;;  %s2420_s4 = inlined_call_operand.vmem [shape: f32[1,128], index: 4, kind: input, shape index: {}]   ;;  %s2421_s6 = inlined_call_operand.vmem [shape: f32[1,128], index: 6, kind: input, shape index: {}]   ;;  %s2422_s7 = inlined_call_operand.vmem [shape: f32[8,128], index: 7, kind: output, shape index: {}]  }
   0x1   :  { %v1714_v0 = vld [vmem:[%s2415_s2 + $0xe4] ss:$16 sps:$4 sm:$0xff]   ;;  %257 = vmatprep.mubr.bf16.mxu0 %v1668_v1  ;;  %298 = vmatprep.mubr.bf16.mxu1 %v1668_v1  ;;  %v1721_v2 = vld [vmem:[%s2415_s2 + $0xe0] ss:$16 sps:$4 sm:$0xff]   ;;  %v1727_v3 = vld [vmem:[%s2415_s2 + $0xec] ss:$16 sps:$4 sm:$0xff]  }
   0x2   :  { %225 = vmatprep.subr.bf16.mxu0 %v1714_v0  ;;  %v1732_v4 = vld [vmem:[%s2415_s2 + $0xe8] ss:$16 sps:$4 sm:$0xff]   ;;  %v1738_v5 = vld [vmem:[%s2415_s2 + $0xc4] ss:$16 sps:$4 sm:$0xff]   ;;  %v1743_v6 = vld [vmem:[%s2415_s2 + $0xc0] ss:$16 sps:$4 sm:$0xff]   ;;  %266 = vmatprep.subr.bf16.mxu1 %v1727_v3 }
   0x3   :  { %226 = vmatpush1.bf16.msra.mxu0 %v1721_v2  ;;  %v1749_v7 = vld [vmem:[%s2415_s2 + $0xcc] ss:$16 sps:$4 sm:$0xff]   ;;  %267 = vmatpush1.bf16.msra.mxu1 %v1732_v4  ;;  %v1756_v8 = vld [vmem:[%s2415_s2 + $0xc8] ss:$16 sps:$4 sm:$0xff]   ;;  %v1762_v9 = vld [vmem:[%s2415_s2 + $0xa4] ss:$16 sps:$4 sm:$0xff]  }
   0x4   :  { %227 = vmatprep.subr.bf16.mxu0 %v1738_v5  ;;  %268 = vmatprep.subr.bf16.mxu1 %v1749_v7  ;;  %v1768_v10 = vld [vmem:[%s2415_s2 + $0xa0] ss:$16 sps:$4 sm:$0xff]   ;;  %v1773_v11 = vld [vmem:[%s2415_s2 + $0xac] ss:$16 sps:$4 sm:$0xff]   ;;  %v1779_v12 = vld [vmem:[%s2415_s2 + $0x84] ss:$16 sps:$4 sm:$0xff]  }
   0x5   :  { %v1785_v13 = vld [vmem:[%s2415_s2 + $0xa8] ss:$16 sps:$4 sm:$0xff]   ;;  %v1791_v14 = vld [vmem:[%s2415_s2 + $0x8c] ss:$16 sps:$4 sm:$0xff]   ;;  %v1797_v15 = vld [vmem:[%s2415_s2 + $0x80] ss:$16 sps:$4 sm:$0xff]  }
   0x6   :  { %v1803_v16 = vld [vmem:[%s2415_s2 + $0x64] ss:$16 sps:$4 sm:$0xff]   ;;  %v1809_v17 = vld [vmem:[%s2415_s2 + $0x88] ss:$16 sps:$4 sm:$0xff]   ;;  %v1815_v18 = vld [vmem:[%s2415_s2 + $0x6c] ss:$16 sps:$4 sm:$0xff]  }
   0x7   :  { %228 = vmatpush1.bf16.msra.mxu0 %v1743_v6  ;;  %269 = vmatpush1.bf16.msra.mxu1 %v1756_v8  ;;  %v1821_v19 = vld [vmem:[%s2415_s2 + $0x60] ss:$16 sps:$4 sm:$0xff]   ;;  %v1827_v20 = vld [vmem:[%s2415_s2 + $0x44] ss:$16 sps:$4 sm:$0xff]   ;;  %v1833_v21 = vld [vmem:[%s2415_s2 + $0x68] ss:$16 sps:$4 sm:$0xff]  }
   0x8   :  { %229 = vmatprep.subr.bf16.mxu0 %v1762_v9  ;;  %270 = vmatprep.subr.bf16.mxu1 %v1773_v11  ;;  %v1839_v22 = vld [vmem:[%s2415_s2 + $0x4c] ss:$16 sps:$4 sm:$0xff]   ;;  %v1845_v23 = vld [vmem:[%s2415_s2 + $0x40] ss:$16 sps:$4 sm:$0xff]   ;;  %v1851_v24 = vld [vmem:[%s2415_s2 + $0x24] ss:$16 sps:$4 sm:$0xff]  }
   0x9   :  { %v1857_v25 = vld [vmem:[%s2415_s2 + $0x48] ss:$16 sps:$4 sm:$0xff]   ;;  %v1863_v26 = vld [vmem:[%s2415_s2 + $0x2c] ss:$16 sps:$4 sm:$0xff]   ;;  %v1869_v27 = vld [vmem:[%s2415_s2 + $0x20] ss:$16 sps:$4 sm:$0xff]  }
   0xa   :  { %v1875_v28 = vld [vmem:[%s2415_s2 + $0x4] ss:$16 sps:$4 sm:$0xff]   ;;  %v1881_v29 = vld [vmem:[%s2415_s2 + $0x28] ss:$16 sps:$4 sm:$0xff]   ;;  %v1887_v30 = vld [vmem:[%s2415_s2 + $0xc] ss:$16 sps:$4 sm:$0xff]  }
   0xb   :  { %230 = vmatpush1.bf16.msra.mxu0 %v1768_v10  ;;  %271 = vmatpush1.bf16.msra.mxu1 %v1785_v13  ;;  %v1893_v31 = vld [vmem:[%s2415_s2] ss:$16 sps:$4 sm:$0xff]   ;;  %v1900_v32 = vld [vmem:[%s2415_s2 + $0x8] ss:$16 sps:$4 sm:$0xff]  }
   0xc   :  { %231 = vmatprep.subr.bf16.mxu0 %v1779_v12  ;;  %272 = vmatprep.subr.bf16.mxu1 %v1791_v14  ;;  %v27_v33 = vld [vmem:[%s2416_s1] sm:$0xff]  ;;  %v28_v35 = vld [vmem:[%s2416_s1 + $0x8] sm:$0xff] }
   0xd   :  { %v29_v34 = vunpack.c.l.bf16 %v27_v33  ;;  %v30_v36 = vunpack.c.h.bf16 %v27_v33  ;;  %v31_v39 = vunpack.c.l.bf16 %v28_v35  ;;  %v32_v51 = vunpack.c.h.bf16 %v28_v35  ;;  %v1955_v35 = vld [vmem:[%s2417_s0] sm:$0xff] }
   0xe   :  { %vm330_vm0 = vcmp.gt.s32.totalorder %v1955_v35, 0  ;;  %vm444_vm2 = vcmp.gt.s32.totalorder %v1955_v35, 1  ;;  %vm558_vm3 = vcmp.gt.s32.totalorder %v1955_v35, 2  ;;  %vm672_vm4 = vcmp.gt.s32.totalorder %v1955_v35, 3 }
   0xf   :  { %232 = vmatpush1.bf16.msra.mxu0 %v1797_v15  ;;  %273 = vmatpush1.bf16.msra.mxu1 %v1809_v17  ;;  %vm1394_vm1 = vmpackc.low %vm330_vm0, %vm330_vm0  ;;  %vm786_vm5 = vcmp.gt.s32.totalorder %v1955_v35, 4  ;;  %vm900_vm6 = vcmp.gt.s32.totalorder %v1955_v35, 5  ;;  %vm1014_vm7 = vcmp.gt.s32.totalorder %v1955_v35, 6  ;;  %v1540_v35 = vld [vmem:[%s2418_s3 + $0x30] sm:$0xff]  }
  0x10   :  { %233 = vmatprep.subr.bf16.mxu0 %v1803_v16  ;;  %274 = vmatprep.subr.bf16.mxu1 %v1815_v18 }
  0x13   :  { %234 = vmatpush1.bf16.msra.mxu0 %v1821_v19  ;;  %275 = vmatpush1.bf16.msra.mxu1 %v1833_v21 }
  0x14   :  { %235 = vmatprep.subr.bf16.mxu0 %v1827_v20  ;;  %276 = vmatprep.subr.bf16.mxu1 %v1839_v22 }
  0x17   :  { %236 = vmatpush1.bf16.msra.mxu0 %v1845_v23  ;;  %277 = vmatpush1.bf16.msra.mxu1 %v1857_v25 }
  0x18   :  { %237 = vmatprep.subr.bf16.mxu0 %v1851_v24  ;;  %278 = vmatprep.subr.bf16.mxu1 %v1863_v26 }
  0x1b   :  { %238 = vmatpush1.bf16.msra.mxu0 %v1869_v27  ;;  %279 = vmatpush1.bf16.msra.mxu1 %v1881_v29 }
  0x1c   :  { %239 = vmatprep.subr.bf16.mxu0 %v1875_v28  ;;  %280 = vmatprep.subr.bf16.mxu1 %v1887_v30 }
  0x1f   :  { %240 = vmatpush1.bf16.msra.mxu0 %v1893_v31  ;;  %281 = vmatpush1.bf16.msra.mxu1 %v1900_v32 }
  0x20   :  { %340 = vmatprep.subr.bf16.mxu0 %v1714_v0  ;;  %381 = vmatprep.subr.bf16.mxu1 %v1727_v3 }
  0x22   :  { %258 = vmatmul.mubr.bf16.vlgmr.msra.gmra.mxu0 %v1668_v1  ;;  %299 = vmatmul.mubr.bf16.vlgmr.msra.gmra.mxu1 %v1668_v1 }
  0x23   :  { %341 = vmatpush1.bf16.msra.mxu0 %v1721_v2  ;;  %372 = vmatprep.mubr.bf16.mxu0 %v1668_v1 }
  0x24   :  { %342 = vmatprep.subr.bf16.mxu0 %v1738_v5  ;;  %382 = vmatpush1.bf16.msra.mxu1 %v1732_v4 }
  0x25   :  { %413 = vmatprep.mubr.bf16.mxu1 %v1668_v1  ;;  %383 = vmatprep.subr.bf16.mxu1 %v1749_v7 }
  0x27   :  { %343 = vmatpush1.bf16.msra.mxu0 %v1743_v6 }
  0x28   :  { %344 = vmatprep.subr.bf16.mxu0 %v1762_v9  ;;  %384 = vmatpush1.bf16.msra.mxu1 %v1756_v8 }
  0x29   :  { %385 = vmatprep.subr.bf16.mxu1 %v1773_v11 }
  0x2b   :  { %345 = vmatpush1.bf16.msra.mxu0 %v1768_v10 }
  0x2c   :  { %346 = vmatprep.subr.bf16.mxu0 %v1779_v12  ;;  %386 = vmatpush1.bf16.msra.mxu1 %v1785_v13 }
  0x2d   :  { %387 = vmatprep.subr.bf16.mxu1 %v1791_v14 }
  0x2f   :  { %347 = vmatpush1.bf16.msra.mxu0 %v1797_v15 }
  0x30   :  { %348 = vmatprep.subr.bf16.mxu0 %v1803_v16  ;;  %388 = vmatpush1.bf16.msra.mxu1 %v1809_v17 }
  0x31   :  { %389 = vmatprep.subr.bf16.mxu1 %v1815_v18 }
  0x33   :  { %349 = vmatpush1.bf16.msra.mxu0 %v1821_v19 }
  0x34   :  { %350 = vmatprep.subr.bf16.mxu0 %v1827_v20  ;;  %390 = vmatpush1.bf16.msra.mxu1 %v1833_v21 }
  0x35   :  { %391 = vmatprep.subr.bf16.mxu1 %v1839_v22 }
  0x37   :  { %351 = vmatpush1.bf16.msra.mxu0 %v1845_v23 }
  0x38   :  { %352 = vmatprep.subr.bf16.mxu0 %v1851_v24  ;;  %392 = vmatpush1.bf16.msra.mxu1 %v1857_v25 }
  0x39   :  { %393 = vmatprep.subr.bf16.mxu1 %v1863_v26 }
  0x3b   :  { %353 = vmatpush1.bf16.msra.mxu0 %v1869_v27 }
  0x3c   :  { %354 = vmatprep.subr.bf16.mxu0 %v1875_v28  ;;  %394 = vmatpush1.bf16.msra.mxu1 %v1881_v29 }
  0x3d   :  { %395 = vmatprep.subr.bf16.mxu1 %v1887_v30 }
  0x3f   :  { %355 = vmatpush1.bf16.msra.mxu0 %v1893_v31 }
  0x40   :  { %454 = vmatprep.subr.bf16.mxu0 %v1714_v0  ;;  %396 = vmatpush1.bf16.msra.mxu1 %v1900_v32 }
  0x41   :  { %495 = vmatprep.subr.bf16.mxu1 %v1727_v3 }
  0xe2   :  { %v259_v37 = vpop.f32.mrf.mxu0  ;;  %v300_v41 = vpop.f32.mrf.mxu1 }
  0xe3   :  { %v307_v38 = vadd.f32 %v259_v37, %v29_v34  ;;  %v309_v47 = vadd.f32 %v300_v41, %v31_v39 }
  0xe4   :  { %v261_v40 = vpop.f32.mrf.mxu0  ;;  %v302_v45 = vpop.f32.mrf.mxu1 }
  0xe5   :  { %v311_v42 = vmul.f32 0.5, %v307_v38  ;;  %v308_v43 = vadd.f32 %v261_v40, %v30_v36  ;;  %v310_v52 = vadd.f32 %v302_v45, %v32_v51  ;;  %v1392_v40 = vld [vmem:[%s2416_s1 + $0x10] sm:$0xff] }
  0xe6   :  { %v263_v44 = vpop.f32.mrf.mxu0  ;;  %v304_v49 = vpop.f32.mrf.mxu1  ;;  %v336_v41 = vunpack.c.l.bf16 %v1392_v40 }
  0xe7   :  { %1555 = vtanh.f32 %v311_v42  ;;  %v315_v46 = vmul.f32 0.5, %v308_v43  ;;  %v320_v53 = vmul.f32 0.5, %v310_v52  ;;  %v337_v42 = vunpack.c.h.bf16 %v1392_v40  ;;  %v1393_v44 = vld [vmem:[%s2416_s1 + $0x18] sm:$0xff] }
  0xe8   :  { %v264_v48 = vpop.f32.mrf.mxu0  ;;  %v305_v50 = vpop.f32.mrf.mxu1 }
  0xe9   :  { %1557 = vtanh.f32 %v315_v46  ;;  %v338_v50 = vunpack.c.l.bf16 %v1393_v44 }
  0xea   :  { %1559 = vtanh.f32 %v309_v47 }
  0xeb   :  { %1561 = vtanh.f32 %v320_v53 }
  0xf4   :  { %v1556_v54 = vpop.eup %1555 }
  0xf5   :  { %v313_v55 = vmul.f32 0.5, %v1556_v54 }
  0xf6   :  { %v1558_v56 = vpop.eup %1557 }
  0xf7   :  { %v314_v57 = vadd.f32 0.5, %v313_v55  ;;  %v317_v58 = vmul.f32 0.5, %v1558_v56  ;;  %v1560_v59 = vpop.eup %1559 }
  0xf8   :  { %v1562_v33 = vpop.eup %1561 }
  0xf9   :  { %v318_v60 = vadd.f32 0.5, %v317_v58  ;;  %v325_v62 = vmul.f32 %v1560_v59, %v314_v57  ;;  %v322_v34 = vmul.f32 0.5, %v1562_v33  ;;  %v339_v58 = vunpack.c.h.bf16 %v1393_v44 }
  0xfb   :  { %v324_v61 = vmul.f32 0.0, %v318_v60  ;;  %v323_v36 = vadd.f32 0.5, %v322_v34 }
  0xfd   :  { %v1949_v63 = vadd.f32 %v325_v62, %v324_v61 }
  0xff   :  { %1563 = vtanh.f32 %v1949_v63 }
 0x10c   :  { %v1564_v37 = vpop.eup %1563 }
 0x10d   :  { %v1958_v38 = vmul.f32 %v1564_v37, %v323_v36 }
 0x10f   :  { %v1395_v39 = vpack.c.bf16 %v1958_v38, %v1958_v38 }
 0x111   :  { %1396 = vmatmul.mubr.msk.bf16.vlgmr.msra.gmra.mxu0 %vm1394_vm1, %v1395_v39  ;;  %1399 = vmatmul.mubr.msk.bf16.vlgmr.msra.gmra.mxu1 %vm1394_vm1, %v1395_v39 }
 0x112   :  { %455 = vmatpush1.bf16.msra.mxu0 %v1721_v2  ;;  %496 = vmatpush1.bf16.msra.mxu1 %v1732_v4 }
 0x113   :  { %456 = vmatprep.subr.bf16.mxu0 %v1738_v5  ;;  %497 = vmatprep.subr.bf16.mxu1 %v1749_v7 }
 0x114   :  { %486 = vmatprep.mubr.bf16.mxu0 %v1668_v1  ;;  %527 = vmatprep.mubr.bf16.mxu1 %v1668_v1 }
 0x116   :  { %457 = vmatpush1.bf16.msra.mxu0 %v1743_v6  ;;  %498 = vmatpush1.bf16.msra.mxu1 %v1756_v8 }
 0x117   :  { %458 = vmatprep.subr.bf16.mxu0 %v1762_v9  ;;  %499 = vmatprep.subr.bf16.mxu1 %v1773_v11 }
 0x11a   :  { %459 = vmatpush1.bf16.msra.mxu0 %v1768_v10  ;;  %500 = vmatpush1.bf16.msra.mxu1 %v1785_v13 }
 0x11b   :  { %460 = vmatprep.subr.bf16.mxu0 %v1779_v12  ;;  %501 = vmatprep.subr.bf16.mxu1 %v1791_v14 }
 0x11e   :  { %461 = vmatpush1.bf16.msra.mxu0 %v1797_v15  ;;  %502 = vmatpush1.bf16.msra.mxu1 %v1809_v17 }
 0x11f   :  { %462 = vmatprep.subr.bf16.mxu0 %v1803_v16  ;;  %503 = vmatprep.subr.bf16.mxu1 %v1815_v18 }
 0x122   :  { %463 = vmatpush1.bf16.msra.mxu0 %v1821_v19  ;;  %504 = vmatpush1.bf16.msra.mxu1 %v1833_v21 }
 0x123   :  { %464 = vmatprep.subr.bf16.mxu0 %v1827_v20  ;;  %505 = vmatprep.subr.bf16.mxu1 %v1839_v22 }
 0x126   :  { %465 = vmatpush1.bf16.msra.mxu0 %v1845_v23  ;;  %506 = vmatpush1.bf16.msra.mxu1 %v1857_v25 }
 0x127   :  { %466 = vmatprep.subr.bf16.mxu0 %v1851_v24  ;;  %507 = vmatprep.subr.bf16.mxu1 %v1863_v26 }
 0x12a   :  { %467 = vmatpush1.bf16.msra.mxu0 %v1869_v27  ;;  %508 = vmatpush1.bf16.msra.mxu1 %v1881_v29 }
 0x12b   :  { %468 = vmatprep.subr.bf16.mxu0 %v1875_v28  ;;  %509 = vmatprep.subr.bf16.mxu1 %v1887_v30 }
 0x12e   :  { %469 = vmatpush1.bf16.msra.mxu0 %v1893_v31  ;;  %510 = vmatpush1.bf16.msra.mxu1 %v1900_v32 }
 0x12f   :  { %568 = vmatprep.subr.bf16.mxu0 %v1714_v0  ;;  %609 = vmatprep.subr.bf16.mxu1 %v1727_v3 }
 0x1d1   :  { %v374_v43 = vpop.f32.mrf.mxu0  ;;  %v415_v45 = vpop.f32.mrf.mxu1 }
 0x1d2   :  { %v422_v46 = vadd.f32 %v374_v43, %v336_v41  ;;  %v424_v57 = vadd.f32 %v415_v45, %v338_v50 }
 0x1d3   :  { %v376_v47 = vpop.f32.mrf.mxu0  ;;  %v417_v48 = vpop.f32.mrf.mxu1 }
 0x1d4   :  { %v426_v49 = vmul.f32 0.5, %v422_v46  ;;  %v423_v51 = vadd.f32 %v376_v47, %v337_v42  ;;  %v425_v59 = vadd.f32 %v417_v48, %v339_v58  ;;  %v331_v48 = vsel %vm330_vm0, %v1958_v38, 0.0  ;;  %v1400_v38 = vld [vmem:[%s2416_s1 + $0x20] sm:$0xff] }
 0x1d5   :  { %v378_v52 = vpop.f32.mrf.mxu0  ;;  %v419_v53 = vpop.f32.mrf.mxu1  ;;  %v450_v50 = vunpack.c.l.bf16 %v1400_v38 }
 0x1d6   :  { %1565 = vtanh.f32 %v426_v49  ;;  %v430_v54 = vmul.f32 0.5, %v423_v51  ;;  %v435_v60 = vmul.f32 0.5, %v425_v59  ;;  %v451_v51 = vunpack.c.h.bf16 %v1400_v38  ;;  %v1401_v53 = vld [vmem:[%s2416_s1 + $0x28] sm:$0xff] }
 0x1d7   :  { %v379_v55 = vpop.f32.mrf.mxu0  ;;  %v420_v56 = vpop.f32.mrf.mxu1  ;;  %v452_v59 = vunpack.c.l.bf16 %v1401_v53 }
 0x1d8   :  { %1567 = vtanh.f32 %v430_v54 }
 0x1d9   :  { %1569 = vtanh.f32 %v424_v57 }
 0x1da   :  { %1571 = vtanh.f32 %v435_v60 }
 0x1e3   :  { %v1566_v61 = vpop.eup %1565 }
 0x1e4   :  { %v428_v62 = vmul.f32 0.5, %v1566_v61 }
 0x1e5   :  { %v1568_v33 = vpop.eup %1567 }
 0x1e6   :  { %v429_v34 = vadd.f32 0.5, %v428_v62  ;;  %v432_v36 = vmul.f32 0.5, %v1568_v33  ;;  %v1570_v39 = vpop.eup %1569 }
 0x1e7   :  { %v1572_v43 = vpop.eup %1571 }
 0x1e8   :  { %v433_v37 = vadd.f32 0.5, %v432_v36  ;;  %v440_v41 = vmul.f32 %v1570_v39, %v429_v34  ;;  %v437_v44 = vmul.f32 0.5, %v1572_v43  ;;  %v453_v39 = vunpack.c.h.bf16 %v1401_v53 }
 0x1ea   :  { %v439_v40 = vmul.f32 %v433_v37, %v1949_v63  ;;  %v438_v45 = vadd.f32 0.5, %v437_v44 }
 0x1ec   :  { %v2006_v42 = vadd.f32 %v440_v41, %v439_v40 }
 0x1ee   :  { %1573 = vtanh.f32 %v2006_v42 }
 0x1fb   :  { %v1574_v46 = vpop.eup %1573 }
 0x1fc   :  { %v443_v47 = vmul.f32 %v1574_v46, %v438_v45 }
 0x1fe   :  { %v2013_v49 = vsel %vm444_vm2, %v443_v47, %v331_v48 }
 0x1ff   :  { %v446_v63 = vpack.c.bf16 %v2013_v49, %v2013_v49 }
 0x201   :  { %487 = vmatmul.mubr.bf16.vlgmr.msra.gmra.mxu0 %v446_v63  ;;  %528 = vmatmul.mubr.bf16.vlgmr.msra.gmra.mxu1 %v446_v63 }
 0x202   :  { %569 = vmatpush1.bf16.msra.mxu0 %v1721_v2  ;;  %610 = vmatpush1.bf16.msra.mxu1 %v1732_v4 }
 0x203   :  { %570 = vmatprep.subr.bf16.mxu0 %v1738_v5  ;;  %611 = vmatprep.subr.bf16.mxu1 %v1749_v7 }
 0x204   :  { %600 = vmatprep.mubr.bf16.mxu0 %v1668_v1  ;;  %641 = vmatprep.mubr.bf16.mxu1 %v1668_v1 }
 0x206   :  { %571 = vmatpush1.bf16.msra.mxu0 %v1743_v6  ;;  %612 = vmatpush1.bf16.msra.mxu1 %v1756_v8 }
 0x207   :  { %572 = vmatprep.subr.bf16.mxu0 %v1762_v9  ;;  %613 = vmatprep.subr.bf16.mxu1 %v1773_v11 }
 0x20a   :  { %573 = vmatpush1.bf16.msra.mxu0 %v1768_v10  ;;  %614 = vmatpush1.bf16.msra.mxu1 %v1785_v13 }
 0x20b   :  { %574 = vmatprep.subr.bf16.mxu0 %v1779_v12  ;;  %615 = vmatprep.subr.bf16.mxu1 %v1791_v14 }
 0x20e   :  { %575 = vmatpush1.bf16.msra.mxu0 %v1797_v15  ;;  %616 = vmatpush1.bf16.msra.mxu1 %v1809_v17 }
 0x20f   :  { %576 = vmatprep.subr.bf16.mxu0 %v1803_v16  ;;  %617 = vmatprep.subr.bf16.mxu1 %v1815_v18 }
 0x212   :  { %577 = vmatpush1.bf16.msra.mxu0 %v1821_v19  ;;  %618 = vmatpush1.bf16.msra.mxu1 %v1833_v21 }
 0x213   :  { %578 = vmatprep.subr.bf16.mxu0 %v1827_v20  ;;  %619 = vmatprep.subr.bf16.mxu1 %v1839_v22 }
 0x216   :  { %579 = vmatpush1.bf16.msra.mxu0 %v1845_v23  ;;  %620 = vmatpush1.bf16.msra.mxu1 %v1857_v25 }
 0x217   :  { %580 = vmatprep.subr.bf16.mxu0 %v1851_v24  ;;  %621 = vmatprep.subr.bf16.mxu1 %v1863_v26 }
 0x21a   :  { %581 = vmatpush1.bf16.msra.mxu0 %v1869_v27  ;;  %622 = vmatpush1.bf16.msra.mxu1 %v1881_v29 }
 0x21b   :  { %582 = vmatprep.subr.bf16.mxu0 %v1875_v28  ;;  %623 = vmatprep.subr.bf16.mxu1 %v1887_v30 }
 0x21e   :  { %583 = vmatpush1.bf16.msra.mxu0 %v1893_v31  ;;  %624 = vmatpush1.bf16.msra.mxu1 %v1900_v32 }
 0x21f   :  { %682 = vmatprep.subr.bf16.mxu0 %v1714_v0  ;;  %723 = vmatprep.subr.bf16.mxu1 %v1727_v3 }
 0x2c1   :  { %v488_v52 = vpop.f32.mrf.mxu0  ;;  %v529_v54 = vpop.f32.mrf.mxu1 }
 0x2c2   :  { %v536_v55 = vadd.f32 %v488_v52, %v450_v50  ;;  %v538_v37 = vadd.f32 %v529_v54, %v452_v59 }
 0x2c3   :  { %v490_v56 = vpop.f32.mrf.mxu0  ;;  %v531_v57 = vpop.f32.mrf.mxu1 }
 0x2c4   :  { %v540_v58 = vmul.f32 0.5, %v536_v55  ;;  %v537_v60 = vadd.f32 %v490_v56, %v451_v51  ;;  %v539_v40 = vadd.f32 %v531_v57, %v453_v39 }
 0x2c5   :  { %v492_v61 = vpop.f32.mrf.mxu0  ;;  %v533_v62 = vpop.f32.mrf.mxu1 }
 0x2c6   :  { %1575 = vtanh.f32 %v540_v58  ;;  %v544_v33 = vmul.f32 0.5, %v537_v60  ;;  %v549_v41 = vmul.f32 0.5, %v539_v40  ;;  %v1403_v61 = vld [vmem:[%s2416_s1 + $0x38] sm:$0xff] }
 0x2c7   :  { %v493_v34 = vpop.f32.mrf.mxu0  ;;  %v534_v36 = vpop.f32.mrf.mxu1  ;;  %v566_v39 = vunpack.c.l.bf16 %v1403_v61 }
 0x2c8   :  { %1577 = vtanh.f32 %v544_v33 }
 0x2c9   :  { %1579 = vtanh.f32 %v538_v37 }
 0x2ca   :  { %1581 = vtanh.f32 %v549_v41 }
 0x2d3   :  { %v1576_v43 = vpop.eup %1575 }
 0x2d4   :  { %v542_v44 = vmul.f32 0.5, %v1576_v43 }
 0x2d5   :  { %v1578_v45 = vpop.eup %1577 }
 0x2d6   :  { %v543_v46 = vadd.f32 0.5, %v542_v44  ;;  %v546_v47 = vmul.f32 0.5, %v1578_v45  ;;  %v1580_v63 = vpop.eup %1579 }
 0x2d7   :  { %v1582_v52 = vpop.eup %1581 }
 0x2d8   :  { %v547_v48 = vadd.f32 0.5, %v546_v47  ;;  %v554_v50 = vmul.f32 %v1580_v63, %v543_v46  ;;  %v551_v53 = vmul.f32 0.5, %v1582_v52 }
 0x2da   :  { %v553_v38 = vmul.f32 %v547_v48, %v2006_v42  ;;  %v552_v54 = vadd.f32 0.5, %v551_v53  ;;  %v1402_v42 = vld [vmem:[%s2416_s1 + $0x30] sm:$0xff]  ;;  %v567_v48 = vunpack.c.h.bf16 %v1403_v61 }
 0x2db   :  { %v565_v59 = vunpack.c.h.bf16 %v1402_v42 }
 0x2dc   :  { %v2058_v51 = vadd.f32 %v554_v50, %v553_v38 }
 0x2de   :  { %1583 = vtanh.f32 %v2058_v51 }
 0x2eb   :  { %v1584_v55 = vpop.eup %1583 }
 0x2ec   :  { %v557_v56 = vmul.f32 %v1584_v55, %v552_v54 }
 0x2ee   :  { %v2063_v57 = vsel %vm558_vm3, %v557_v56, %v2013_v49  ;;  %v564_v49 = vunpack.c.l.bf16 %v1402_v42 }
 0x2ef   :  { %v560_v58 = vpack.c.bf16 %v2063_v57, %v2063_v57 }
 0x2f1   :  { %601 = vmatmul.mubr.bf16.vlgmr.msra.gmra.mxu0 %v560_v58  ;;  %642 = vmatmul.mubr.bf16.vlgmr.msra.gmra.mxu1 %v560_v58 }
 0x2f2   :  { %683 = vmatpush1.bf16.msra.mxu0 %v1721_v2  ;;  %724 = vmatpush1.bf16.msra.mxu1 %v1732_v4 }
 0x2f3   :  { %684 = vmatprep.subr.bf16.mxu0 %v1738_v5  ;;  %725 = vmatprep.subr.bf16.mxu1 %v1749_v7 }
 0x2f4   :  { %714 = vmatprep.mubr.bf16.mxu0 %v1668_v1  ;;  %755 = vmatprep.mubr.bf16.mxu1 %v1668_v1 }
 0x2f6   :  { %685 = vmatpush1.bf16.msra.mxu0 %v1743_v6  ;;  %726 = vmatpush1.bf16.msra.mxu1 %v1756_v8 }
 0x2f7   :  { %686 = vmatprep.subr.bf16.mxu0 %v1762_v9  ;;  %727 = vmatprep.subr.bf16.mxu1 %v1773_v11 }
 0x2fa   :  { %687 = vmatpush1.bf16.msra.mxu0 %v1768_v10  ;;  %728 = vmatpush1.bf16.msra.mxu1 %v1785_v13 }
 0x2fb   :  { %688 = vmatprep.subr.bf16.mxu0 %v1779_v12  ;;  %729 = vmatprep.subr.bf16.mxu1 %v1791_v14 }
 0x2fe   :  { %689 = vmatpush1.bf16.msra.mxu0 %v1797_v15  ;;  %730 = vmatpush1.bf16.msra.mxu1 %v1809_v17 }
 0x2ff   :  { %690 = vmatprep.subr.bf16.mxu0 %v1803_v16  ;;  %731 = vmatprep.subr.bf16.mxu1 %v1815_v18 }
 0x302   :  { %691 = vmatpush1.bf16.msra.mxu0 %v1821_v19  ;;  %732 = vmatpush1.bf16.msra.mxu1 %v1833_v21 }
 0x303   :  { %692 = vmatprep.subr.bf16.mxu0 %v1827_v20  ;;  %733 = vmatprep.subr.bf16.mxu1 %v1839_v22 }
 0x306   :  { %693 = vmatpush1.bf16.msra.mxu0 %v1845_v23  ;;  %734 = vmatpush1.bf16.msra.mxu1 %v1857_v25 }
 0x307   :  { %694 = vmatprep.subr.bf16.mxu0 %v1851_v24  ;;  %735 = vmatprep.subr.bf16.mxu1 %v1863_v26 }
 0x30a   :  { %695 = vmatpush1.bf16.msra.mxu0 %v1869_v27  ;;  %736 = vmatpush1.bf16.msra.mxu1 %v1881_v29 }
 0x30b   :  { %696 = vmatprep.subr.bf16.mxu0 %v1875_v28  ;;  %737 = vmatprep.subr.bf16.mxu1 %v1887_v30 }
 0x30e   :  { %697 = vmatpush1.bf16.msra.mxu0 %v1893_v31  ;;  %738 = vmatpush1.bf16.msra.mxu1 %v1900_v32 }
 0x30f   :  { %796 = vmatprep.subr.bf16.mxu0 %v1714_v0  ;;  %837 = vmatprep.subr.bf16.mxu1 %v1727_v3 }
 0x3b1   :  { %v602_v60 = vpop.f32.mrf.mxu0  ;;  %v643_v62 = vpop.f32.mrf.mxu1 }
 0x3b2   :  { %v650_v33 = vadd.f32 %v602_v60, %v564_v49  ;;  %v652_v47 = vadd.f32 %v643_v62, %v566_v39 }
 0x3b3   :  { %v604_v34 = vpop.f32.mrf.mxu0  ;;  %v645_v36 = vpop.f32.mrf.mxu1 }
 0x3b4   :  { %v654_v37 = vmul.f32 0.5, %v650_v33  ;;  %v651_v40 = vadd.f32 %v604_v34, %v565_v59  ;;  %v653_v63 = vadd.f32 %v645_v36, %v567_v48 }
 0x3b5   :  { %v606_v41 = vpop.f32.mrf.mxu0  ;;  %v647_v43 = vpop.f32.mrf.mxu1 }
 0x3b6   :  { %1585 = vtanh.f32 %v654_v37  ;;  %v658_v44 = vmul.f32 0.5, %v651_v40  ;;  %v663_v38 = vmul.f32 0.5, %v653_v63  ;;  %v1405_v41 = vld [vmem:[%s2416_s1 + $0x48] sm:$0xff] }
 0x3b7   :  { %v607_v45 = vpop.f32.mrf.mxu0  ;;  %v648_v46 = vpop.f32.mrf.mxu1  ;;  %v680_v48 = vunpack.c.l.bf16 %v1405_v41 }
 0x3b8   :  { %1587 = vtanh.f32 %v658_v44 }
 0x3b9   :  { %1589 = vtanh.f32 %v652_v47 }
 0x3ba   :  { %1591 = vtanh.f32 %v663_v38 }
 0x3c3   :  { %v1586_v50 = vpop.eup %1585 }
 0x3c4   :  { %v656_v52 = vmul.f32 0.5, %v1586_v50 }
 0x3c5   :  { %v1588_v53 = vpop.eup %1587 }
 0x3c6   :  { %v657_v54 = vadd.f32 0.5, %v656_v52  ;;  %v660_v55 = vmul.f32 0.5, %v1588_v53  ;;  %v1590_v58 = vpop.eup %1589 }
 0x3c7   :  { %v1592_v60 = vpop.eup %1591 }
 0x3c8   :  { %v661_v56 = vadd.f32 0.5, %v660_v55  ;;  %v668_v49 = vmul.f32 %v1590_v58, %v657_v54  ;;  %v665_v61 = vmul.f32 0.5, %v1592_v60  ;;  %v681_v54 = vunpack.c.h.bf16 %v1405_v41 }
 0x3ca   :  { %v667_v42 = vmul.f32 %v661_v56, %v2058_v51  ;;  %v666_v62 = vadd.f32 0.5, %v665_v61  ;;  %v1404_v51 = vld [vmem:[%s2416_s1 + $0x40] sm:$0xff] }
 0x3cb   :  { %v679_v39 = vunpack.c.h.bf16 %v1404_v51 }
 0x3cc   :  { %v2108_v59 = vadd.f32 %v668_v49, %v667_v42 }
 0x3ce   :  { %1593 = vtanh.f32 %v2108_v59 }
 0x3db   :  { %v1594_v33 = vpop.eup %1593 }
 0x3dc   :  { %v671_v34 = vmul.f32 %v1594_v33, %v666_v62 }
 0x3de   :  { %v2113_v36 = vsel %vm672_vm4, %v671_v34, %v2063_v57  ;;  %v678_v57 = vunpack.c.l.bf16 %v1404_v51 }
 0x3df   :  { %v674_v37 = vpack.c.bf16 %v2113_v36, %v2113_v36 }
 0x3e1   :  { %715 = vmatmul.mubr.bf16.vlgmr.msra.gmra.mxu0 %v674_v37  ;;  %756 = vmatmul.mubr.bf16.vlgmr.msra.gmra.mxu1 %v674_v37 }
 0x3e2   :  { %797 = vmatpush1.bf16.msra.mxu0 %v1721_v2  ;;  %838 = vmatpush1.bf16.msra.mxu1 %v1732_v4 }
 0x3e3   :  { %798 = vmatprep.subr.bf16.mxu0 %v1738_v5  ;;  %839 = vmatprep.subr.bf16.mxu1 %v1749_v7 }
 0x3e4   :  { %828 = vmatprep.mubr.bf16.mxu0 %v1668_v1  ;;  %869 = vmatprep.mubr.bf16.mxu1 %v1668_v1 }
 0x3e6   :  { %799 = vmatpush1.bf16.msra.mxu0 %v1743_v6  ;;  %840 = vmatpush1.bf16.msra.mxu1 %v1756_v8 }
 0x3e7   :  { %800 = vmatprep.subr.bf16.mxu0 %v1762_v9  ;;  %841 = vmatprep.subr.bf16.mxu1 %v1773_v11 }
 0x3ea   :  { %801 = vmatpush1.bf16.msra.mxu0 %v1768_v10  ;;  %842 = vmatpush1.bf16.msra.mxu1 %v1785_v13 }
 0x3eb   :  { %802 = vmatprep.subr.bf16.mxu0 %v1779_v12  ;;  %843 = vmatprep.subr.bf16.mxu1 %v1791_v14 }
 0x3ee   :  { %803 = vmatpush1.bf16.msra.mxu0 %v1797_v15  ;;  %844 = vmatpush1.bf16.msra.mxu1 %v1809_v17 }
 0x3ef   :  { %804 = vmatprep.subr.bf16.mxu0 %v1803_v16  ;;  %845 = vmatprep.subr.bf16.mxu1 %v1815_v18 }
 0x3f2   :  { %805 = vmatpush1.bf16.msra.mxu0 %v1821_v19  ;;  %846 = vmatpush1.bf16.msra.mxu1 %v1833_v21 }
 0x3f3   :  { %806 = vmatprep.subr.bf16.mxu0 %v1827_v20  ;;  %847 = vmatprep.subr.bf16.mxu1 %v1839_v22 }
 0x3f6   :  { %807 = vmatpush1.bf16.msra.mxu0 %v1845_v23  ;;  %848 = vmatpush1.bf16.msra.mxu1 %v1857_v25 }
 0x3f7   :  { %808 = vmatprep.subr.bf16.mxu0 %v1851_v24  ;;  %849 = vmatprep.subr.bf16.mxu1 %v1863_v26 }
 0x3fa   :  { %809 = vmatpush1.bf16.msra.mxu0 %v1869_v27  ;;  %850 = vmatpush1.bf16.msra.mxu1 %v1881_v29 }
 0x3fb   :  { %810 = vmatprep.subr.bf16.mxu0 %v1875_v28  ;;  %851 = vmatprep.subr.bf16.mxu1 %v1887_v30 }
 0x3fe   :  { %811 = vmatpush1.bf16.msra.mxu0 %v1893_v31  ;;  %852 = vmatpush1.bf16.msra.mxu1 %v1900_v32 }
 0x3ff   :  { %910 = vmatprep.subr.bf16.mxu0 %v1714_v0  ;;  %951 = vmatprep.subr.bf16.mxu1 %v1727_v3 }
 0x4a1   :  { %v716_v40 = vpop.f32.mrf.mxu0  ;;  %v757_v43 = vpop.f32.mrf.mxu1 }
 0x4a2   :  { %v764_v44 = vadd.f32 %v716_v40, %v678_v57  ;;  %v766_v53 = vadd.f32 %v757_v43, %v680_v48 }
 0x4a3   :  { %v718_v45 = vpop.f32.mrf.mxu0  ;;  %v759_v46 = vpop.f32.mrf.mxu1 }
 0x4a4   :  { %v768_v47 = vmul.f32 0.5, %v764_v44  ;;  %v765_v0 = vadd.f32 %v718_v45, %v679_v39  ;;  %v767_v55 = vadd.f32 %v759_v46, %v681_v54  ;;  %v1639_v54 = vld [vmem:[%s2415_s2 + $0xc4] ss:$16 sps:$4 sm:$0xff]  }
 0x4a5   :  { %v720_v63 = vpop.f32.mrf.mxu0  ;;  %v761_v3 = vpop.f32.mrf.mxu1 }
 0x4a6   :  { %1595 = vtanh.f32 %v768_v47  ;;  %v772_v38 = vmul.f32 0.5, %v765_v0  ;;  %v777_v56 = vmul.f32 0.5, %v767_v55  ;;  %v1640_v55 = vld [vmem:[%s2415_s2 + $0xcc] ss:$16 sps:$4 sm:$0xff]  }
 0x4a7   :  { %v721_v50 = vpop.f32.mrf.mxu0  ;;  %v762_v52 = vpop.f32.mrf.mxu1 }
 0x4a8   :  { %1597 = vtanh.f32 %v772_v38  ;;  %v1637_v52 = vld [vmem:[%s2415_s2 + $0xe0] ss:$16 sps:$4 sm:$0xff]  }
 0x4a9   :  { %1599 = vtanh.f32 %v766_v53  ;;  %v1638_v53 = vld [vmem:[%s2415_s2 + $0xe8] ss:$16 sps:$4 sm:$0xff]  }
 0x4aa   :  { %1601 = vtanh.f32 %v777_v56  ;;  %v1641_v56 = vld [vmem:[%s2415_s2 + $0xc0] ss:$16 sps:$4 sm:$0xff]  }
 0x4b3   :  { %v1596_v58 = vpop.eup %1595 }
 0x4b4   :  { %v770_v42 = vmul.f32 0.5, %v1596_v58  ;;  %v1642_v58 = vld [vmem:[%s2415_s2 + $0xc8] ss:$16 sps:$4 sm:$0xff]  }
 0x4b5   :  { %v1598_v49 = vpop.eup %1597 }
 0x4b6   :  { %v771_v60 = vadd.f32 0.5, %v770_v42  ;;  %v774_v61 = vmul.f32 0.5, %v1598_v49  ;;  %v1600_v33 = vpop.eup %1599  ;;  %v1643_v42 = vld [vmem:[%s2415_s2 + $0xa4] ss:$16 sps:$4 sm:$0xff]   ;;  %v1644_v49 = vld [vmem:[%s2415_s2 + $0xac] ss:$16 sps:$4 sm:$0xff]  }
 0x4b7   :  { %v1602_v57 = vpop.eup %1601 }
 0x4b8   :  { %v775_v62 = vadd.f32 0.5, %v774_v61  ;;  %v782_v37 = vmul.f32 %v1600_v33, %v771_v60  ;;  %v779_v39 = vmul.f32 0.5, %v1602_v57  ;;  %v1646_v60 = vld [vmem:[%s2415_s2 + $0xa8] ss:$16 sps:$4 sm:$0xff]   ;;  %v1647_v61 = vld [vmem:[%s2415_s2 + $0x84] ss:$16 sps:$4 sm:$0xff]  }
 0x4b9   :  { %v1649_v33 = vld [vmem:[%s2415_s2 + $0x80] ss:$16 sps:$4 sm:$0xff]  }
 0x4ba   :  { %v781_v34 = vmul.f32 %v775_v62, %v2108_v59  ;;  %v780_v40 = vadd.f32 0.5, %v779_v39  ;;  %v1648_v62 = vld [vmem:[%s2415_s2 + $0x8c] ss:$16 sps:$4 sm:$0xff]   ;;  %v1653_v57 = vld [vmem:[%s2415_s2 + $0x60] ss:$16 sps:$4 sm:$0xff]  }
 0x4bb   :  { %v1654_v39 = vld [vmem:[%s2415_s2 + $0x68] ss:$16 sps:$4 sm:$0xff]  }
 0x4bc   :  { %v2158_v51 = vadd.f32 %v782_v37, %v781_v34  ;;  %v1650_v34 = vld [vmem:[%s2415_s2 + $0x88] ss:$16 sps:$4 sm:$0xff]   ;;  %v1651_v37 = vld [vmem:[%s2415_s2 + $0x64] ss:$16 sps:$4 sm:$0xff]  }
 0x4be   :  { %1603 = vtanh.f32 %v2158_v51 }
 0x4cb   :  { %v1604_v41 = vpop.eup %1603 }
 0x4cc   :  { %v785_v43 = vmul.f32 %v1604_v41, %v780_v40  ;;  %v1655_v40 = vld [vmem:[%s2415_s2 + $0x44] ss:$16 sps:$4 sm:$0xff]   ;;  %v1656_v41 = vld [vmem:[%s2415_s2 + $0x4c] ss:$16 sps:$4 sm:$0xff]  }
 0x4ce   :  { %v2163_v44 = vsel %vm786_vm5, %v785_v43, %v2113_v36  ;;  %v1657_v43 = vld [vmem:[%s2415_s2 + $0x40] ss:$16 sps:$4 sm:$0xff]  }
 0x4cf   :  { %v788_v45 = vpack.c.bf16 %v2163_v44, %v2163_v44 }
 0x4d1   :  { %829 = vmatmul.mubr.bf16.vlgmr.msra.gmra.mxu0 %v788_v45  ;;  %870 = vmatmul.mubr.bf16.vlgmr.msra.gmra.mxu1 %v788_v45  ;;  %v1659_v45 = vld [vmem:[%s2415_s2 + $0x24] ss:$16 sps:$4 sm:$0xff]  }
 0x4d2   :  { %911 = vmatpush1.bf16.msra.mxu0 %v1721_v2  ;;  %952 = vmatpush1.bf16.msra.mxu1 %v1732_v4  ;;  %v1635_v2 = vld [vmem:[%s2415_s2 + $0xe4] ss:$16 sps:$4 sm:$0xff]   ;;  %v1636_v4 = vld [vmem:[%s2415_s2 + $0xec] ss:$16 sps:$4 sm:$0xff]  }
 0x4d3   :  { %912 = vmatprep.subr.bf16.mxu0 %v1738_v5  ;;  %953 = vmatprep.subr.bf16.mxu1 %v1749_v7  ;;  %v1406_v5 = vld [vmem:[%s2416_s1 + $0x50] sm:$0xff] }
 0x4d4   :  { %942 = vmatprep.mubr.bf16.mxu0 %v1668_v1  ;;  %983 = vmatprep.mubr.bf16.mxu1 %v1668_v1  ;;  %v793_v7 = vunpack.c.h.bf16 %v1406_v5 }
 0x4d6   :  { %913 = vmatpush1.bf16.msra.mxu0 %v1743_v6  ;;  %954 = vmatpush1.bf16.msra.mxu1 %v1756_v8  ;;  %v792_v6 = vunpack.c.l.bf16 %v1406_v5  ;;  %v1662_v5 = vld [vmem:[%s2415_s2 + $0x28] ss:$16 sps:$4 sm:$0xff]  }
 0x4d7   :  { %914 = vmatprep.subr.bf16.mxu0 %v1762_v9  ;;  %955 = vmatprep.subr.bf16.mxu1 %v1773_v11  ;;  %v1407_v9 = vld [vmem:[%s2416_s1 + $0x58] sm:$0xff] }
 0x4da   :  { %915 = vmatpush1.bf16.msra.mxu0 %v1768_v10  ;;  %956 = vmatpush1.bf16.msra.mxu1 %v1785_v13 }
 0x4db   :  { %916 = vmatprep.subr.bf16.mxu0 %v1779_v12  ;;  %957 = vmatprep.subr.bf16.mxu1 %v1791_v14 }
 0x4de   :  { %917 = vmatpush1.bf16.msra.mxu0 %v1797_v15  ;;  %958 = vmatpush1.bf16.msra.mxu1 %v1809_v17  ;;  %v794_v15 = vunpack.c.l.bf16 %v1407_v9 }
 0x4df   :  { %918 = vmatprep.subr.bf16.mxu0 %v1803_v16  ;;  %959 = vmatprep.subr.bf16.mxu1 %v1815_v18 }
 0x4e2   :  { %919 = vmatpush1.bf16.msra.mxu0 %v1821_v19  ;;  %960 = vmatpush1.bf16.msra.mxu1 %v1833_v21 }
 0x4e3   :  { %920 = vmatprep.subr.bf16.mxu0 %v1827_v20  ;;  %961 = vmatprep.subr.bf16.mxu1 %v1839_v22 }
 0x4e6   :  { %921 = vmatpush1.bf16.msra.mxu0 %v1845_v23  ;;  %962 = vmatpush1.bf16.msra.mxu1 %v1857_v25  ;;  %v795_v23 = vunpack.c.h.bf16 %v1407_v9  ;;  %v1666_v9 = vld [vmem:[%s2415_s2 + $0x8] ss:$16 sps:$4 sm:$0xff]  }
 0x4e7   :  { %922 = vmatprep.subr.bf16.mxu0 %v1851_v24  ;;  %963 = vmatprep.subr.bf16.mxu1 %v1863_v26 }
 0x4ea   :  { %923 = vmatpush1.bf16.msra.mxu0 %v1869_v27  ;;  %964 = vmatpush1.bf16.msra.mxu1 %v1881_v29 }
 0x4eb   :  { %924 = vmatprep.subr.bf16.mxu0 %v1875_v28  ;;  %965 = vmatprep.subr.bf16.mxu1 %v1887_v30 }
 0x4ee   :  { %925 = vmatpush1.bf16.msra.mxu0 %v1893_v31  ;;  %966 = vmatpush1.bf16.msra.mxu1 %v1900_v32 }
 0x4ef   :  { %1024 = vmatprep.subr.bf16.mxu0 %v1635_v2  ;;  %1065 = vmatprep.subr.bf16.mxu1 %v1636_v4  ;;  %v1660_v2 = vld [vmem:[%s2415_s2 + $0x2c] ss:$16 sps:$4 sm:$0xff]   ;;  %v1661_v4 = vld [vmem:[%s2415_s2 + $0x20] ss:$16 sps:$4 sm:$0xff]  }
 0x591   :  { %v830_v8 = vpop.f32.mrf.mxu0  ;;  %v871_v10 = vpop.f32.mrf.mxu1 }
 0x592   :  { %v878_v11 = vadd.f32 %v830_v8, %v792_v6  ;;  %v880_v22 = vadd.f32 %v871_v10, %v794_v15  ;;  %v1663_v6 = vld [vmem:[%s2415_s2 + $0x4] ss:$16 sps:$4 sm:$0xff]   ;;  %v1665_v8 = vld [vmem:[%s2415_s2] ss:$16 sps:$4 sm:$0xff]  }
 0x593   :  { %v832_v12 = vpop.f32.mrf.mxu0  ;;  %v873_v13 = vpop.f32.mrf.mxu1  ;;  %v1408_v10 = vld [vmem:[%s2416_s1 + $0x60] sm:$0xff] }
 0x594   :  { %v882_v14 = vmul.f32 0.5, %v878_v11  ;;  %v879_v16 = vadd.f32 %v832_v12, %v793_v7  ;;  %v881_v24 = vadd.f32 %v873_v13, %v795_v23  ;;  %v1664_v7 = vld [vmem:[%s2415_s2 + $0xc] ss:$16 sps:$4 sm:$0xff]   ;;  %v906_v11 = vunpack.c.l.bf16 %v1408_v10 }
 0x595   :  { %v834_v17 = vpop.f32.mrf.mxu0  ;;  %v875_v18 = vpop.f32.mrf.mxu1  ;;  %v907_v12 = vunpack.c.h.bf16 %v1408_v10 }
 0x596   :  { %1605 = vtanh.f32 %v882_v14  ;;  %v886_v19 = vmul.f32 0.5, %v879_v16  ;;  %v891_v25 = vmul.f32 0.5, %v881_v24  ;;  %v1409_v14 = vld [vmem:[%s2416_s1 + $0x68] sm:$0xff] }
 0x597   :  { %v835_v20 = vpop.f32.mrf.mxu0  ;;  %v876_v21 = vpop.f32.mrf.mxu1 }
 0x598   :  { %1607 = vtanh.f32 %v886_v19  ;;  %v908_v20 = vunpack.c.l.bf16 %v1409_v14 }
 0x599   :  { %1609 = vtanh.f32 %v880_v22 }
 0x59a   :  { %1611 = vtanh.f32 %v891_v25 }
 0x5a3   :  { %v1606_v26 = vpop.eup %1605 }
 0x5a4   :  { %v884_v27 = vmul.f32 0.5, %v1606_v26 }
 0x5a5   :  { %v1608_v28 = vpop.eup %1607 }
 0x5a6   :  { %v885_v29 = vadd.f32 0.5, %v884_v27  ;;  %v888_v30 = vmul.f32 0.5, %v1608_v28  ;;  %v1610_v32 = vpop.eup %1609  ;;  %v909_v28 = vunpack.c.h.bf16 %v1409_v14 }
 0x5a7   :  { %v1612_v47 = vpop.eup %1611 }
 0x5a8   :  { %v889_v31 = vadd.f32 0.5, %v888_v30  ;;  %v896_v36 = vmul.f32 %v1610_v32, %v885_v29  ;;  %v893_v48 = vmul.f32 0.5, %v1612_v47 }
 0x5aa   :  { %v895_v59 = vmul.f32 %v889_v31, %v2158_v51  ;;  %v894_v0 = vadd.f32 0.5, %v893_v48  ;;  %v1652_v51 = vld [vmem:[%s2415_s2 + $0x6c] ss:$16 sps:$4 sm:$0xff]  }
 0x5ac   :  { %v2212_v46 = vadd.f32 %v896_v36, %v895_v59 }
 0x5ae   :  { %1613 = vtanh.f32 %v2212_v46 }
 0x5bb   :  { %v1614_v63 = vpop.eup %1613 }
 0x5bc   :  { %v899_v3 = vmul.f32 %v1614_v63, %v894_v0 }
 0x5be   :  { %v2217_v38 = vsel %vm900_vm6, %v899_v3, %v2163_v44  ;;  %v1658_v44 = vld [vmem:[%s2415_s2 + $0x48] ss:$16 sps:$4 sm:$0xff]  }
 0x5bf   :  { %v902_v50 = vpack.c.bf16 %v2217_v38, %v2217_v38 }
 0x5c1   :  { %943 = vmatmul.mubr.bf16.vlgmr.msra.gmra.mxu0 %v902_v50  ;;  %984 = vmatmul.mubr.bf16.vlgmr.msra.gmra.mxu1 %v902_v50 }
 0x5c2   :  { %1025 = vmatpush1.bf16.msra.mxu0 %v1637_v52  ;;  %1066 = vmatpush1.bf16.msra.mxu1 %v1638_v53 }
 0x5c3   :  { %1026 = vmatprep.subr.bf16.mxu0 %v1639_v54  ;;  %1067 = vmatprep.subr.bf16.mxu1 %v1640_v55 }
 0x5c4   :  { %1056 = vmatprep.mubr.bf16.mxu0 %v1668_v1  ;;  %1097 = vmatprep.mubr.bf16.mxu1 %v1668_v1  ;;  %v1645_v1 = vld [vmem:[%s2415_s2 + $0xa0] ss:$16 sps:$4 sm:$0xff]  }
 0x5c6   :  { %1027 = vmatpush1.bf16.msra.mxu0 %v1641_v56  ;;  %1068 = vmatpush1.bf16.msra.mxu1 %v1642_v58 }
 0x5c7   :  { %1028 = vmatprep.subr.bf16.mxu0 %v1643_v42  ;;  %1069 = vmatprep.subr.bf16.mxu1 %v1644_v49  ;;  %v1669_v49 = vmov 0.0  }
 0x5ca   :  { %1029 = vmatpush1.bf16.msra.mxu0 %v1645_v1  ;;  %1070 = vmatpush1.bf16.msra.mxu1 %v1646_v60  ;;  %v1542_v1 = vld [vmem:[%s2418_s3 + $0x20] sm:$0xff]   ;;  %v1543_v60 = vld [vmem:[%s2418_s3 + $0x18] sm:$0xff]  }
 0x5cb   :  { %1030 = vmatprep.subr.bf16.mxu0 %v1647_v61  ;;  %1071 = vmatprep.subr.bf16.mxu1 %v1648_v62  ;;  %v1544_v61 = vld [vmem:[%s2418_s3 + $0x10] sm:$0xff]   ;;  %v1545_v62 = vld [vmem:[%s2418_s3 + $0x8] sm:$0xff]  }
 0x5ce   :  { %1031 = vmatpush1.bf16.msra.mxu0 %v1649_v33  ;;  %1072 = vmatpush1.bf16.msra.mxu1 %v1650_v34  ;;  %v1546_v33 = vld [vmem:[%s2418_s3] sm:$0xff]   ;;  %v1547_v34 = vld [vmem:[%s2419_s5 + $0x38] sm:$0xff]  }
 0x5cf   :  { %1032 = vmatprep.subr.bf16.mxu0 %v1651_v37  ;;  %1073 = vmatprep.subr.bf16.mxu1 %v1652_v51  ;;  %v1548_v37 = vld [vmem:[%s2419_s5 + $0x30] sm:$0xff]   ;;  %v1549_v51 = vld [vmem:[%s2419_s5 + $0x28] sm:$0xff]  }
 0x5d2   :  { %1033 = vmatpush1.bf16.msra.mxu0 %v1653_v57  ;;  %1074 = vmatpush1.bf16.msra.mxu1 %v1654_v39  ;;  %v1550_v57 = vld [vmem:[%s2419_s5 + $0x20] sm:$0xff]   ;;  %v1551_v39 = vld [vmem:[%s2419_s5 + $0x18] sm:$0xff]  }
 0x5d3   :  { %1034 = vmatprep.subr.bf16.mxu0 %v1655_v40  ;;  %1075 = vmatprep.subr.bf16.mxu1 %v1656_v41  ;;  %v1552_v40 = vld [vmem:[%s2419_s5 + $0x10] sm:$0xff]  }
 0x5d4   :  { %v1410_v41 = vld [vmem:[%s2416_s1 + $0x70] sm:$0xff] }
 0x5d6   :  { %1035 = vmatpush1.bf16.msra.mxu0 %v1657_v43  ;;  %1076 = vmatpush1.bf16.msra.mxu1 %v1658_v44  ;;  %v1020_v43 = vunpack.c.l.bf16 %v1410_v41  ;;  %v1021_v44 = vunpack.c.h.bf16 %v1410_v41 }
 0x5d7   :  { %1036 = vmatprep.subr.bf16.mxu0 %v1659_v45  ;;  %1077 = vmatprep.subr.bf16.mxu1 %v1660_v2  ;;  %v1411_v2 = vld [vmem:[%s2416_s1 + $0x78] sm:$0xff] }
 0x5da   :  { %1037 = vmatpush1.bf16.msra.mxu0 %v1661_v4  ;;  %1078 = vmatpush1.bf16.msra.mxu1 %v1662_v5 }
 0x5db   :  { %1038 = vmatprep.subr.bf16.mxu0 %v1663_v6  ;;  %1079 = vmatprep.subr.bf16.mxu1 %v1664_v7 }
 0x5de   :  { %1039 = vmatpush1.bf16.msra.mxu0 %v1665_v8  ;;  %1080 = vmatpush1.bf16.msra.mxu1 %v1666_v9  ;;  %v1022_v9 = vunpack.c.l.bf16 %v1411_v2 }
 0x5df   :  { %1448 = vmatprep.subr.bf16.mxu0 %v1669_v49  ;;  %1468 = vmatprep.subr.bf16.mxu1 %v1669_v49 }
 0x681   :  { %v944_v13 = vpop.f32.mrf.mxu0  ;;  %v985_v15 = vpop.f32.mrf.mxu1 }
 0x682   :  { %v992_v16 = vadd.f32 %v944_v13, %v906_v11  ;;  %v994_v27 = vadd.f32 %v985_v15, %v908_v20 }
 0x683   :  { %v946_v17 = vpop.f32.mrf.mxu0  ;;  %v987_v18 = vpop.f32.mrf.mxu1 }
 0x684   :  { %v996_v19 = vmul.f32 0.5, %v992_v16  ;;  %v993_v21 = vadd.f32 %v946_v17, %v907_v12  ;;  %v995_v29 = vadd.f32 %v987_v18, %v909_v28  ;;  %v1023_v17 = vunpack.c.h.bf16 %v1411_v2 }
 0x685   :  { %v948_v22 = vpop.f32.mrf.mxu0  ;;  %v989_v23 = vpop.f32.mrf.mxu1 }
 0x686   :  { %1615 = vtanh.f32 %v996_v19  ;;  %v1000_v24 = vmul.f32 0.5, %v993_v21  ;;  %v1005_v30 = vmul.f32 0.5, %v995_v29 }
 0x687   :  { %v949_v25 = vpop.f32.mrf.mxu0  ;;  %v990_v26 = vpop.f32.mrf.mxu1 }
 0x688   :  { %1617 = vtanh.f32 %v1000_v24 }
 0x689   :  { %1619 = vtanh.f32 %v994_v27 }
 0x68a   :  { %1621 = vtanh.f32 %v1005_v30 }
 0x693   :  { %v1616_v31 = vpop.eup %1615 }
 0x694   :  { %v998_v32 = vmul.f32 0.5, %v1616_v31 }
 0x695   :  { %v1618_v59 = vpop.eup %1617 }
 0x696   :  { %v999_v36 = vadd.f32 0.5, %v998_v32  ;;  %v1002_v47 = vmul.f32 0.5, %v1618_v59  ;;  %v1620_v0 = vpop.eup %1619 }
 0x697   :  { %v1622_v52 = vpop.eup %1621 }
 0x698   :  { %v1003_v48 = vadd.f32 0.5, %v1002_v47  ;;  %v1010_v3 = vmul.f32 %v1620_v0, %v999_v36  ;;  %v1007_v53 = vmul.f32 0.5, %v1622_v52  ;;  %v1667_v36 = vld [vmem:[%s2417_s0] sm:$0xff] }
 0x699   :  { %vm1128_vm9 = vcmp.gt.s32.totalorder %v1667_v36, 7 }
 0x69a   :  { %v1009_v63 = vmul.f32 %v1003_v48, %v2212_v46  ;;  %v1008_v54 = vadd.f32 0.5, %v1007_v53  ;;  %v1539_v46 = vld [vmem:[%s2418_s3 + $0x38] sm:$0xff]  }
 0x69c   :  { %v2320_v50 = vadd.f32 %v1010_v3, %v1009_v63  ;;  %v1553_v63 = vld [vmem:[%s2419_s5 + $0x8] sm:$0xff]   ;;  %v1554_v3 = vld [vmem:[%s2419_s5] sm:$0xff]  }
 0x69e   :  { %1623 = vtanh.f32 %v2320_v50 }
 0x6ab   :  { %v1624_v55 = vpop.eup %1623 }
 0x6ac   :  { %v1013_v56 = vmul.f32 %v1624_v55, %v1008_v54 }
 0x6ae   :  { %v2325_v58 = vsel %vm1014_vm7, %v1013_v56, %v2217_v38  ;;  %v1541_v38 = vld [vmem:[%s2418_s3 + $0x28] sm:$0xff]  }
 0x6af   :  { %v1016_v42 = vpack.c.bf16 %v2325_v58, %v2325_v58 }
 0x6b1   :  { %1057 = vmatmul.mubr.bf16.vlgmr.msra.gmra.mxu0 %v1016_v42  ;;  %1098 = vmatmul.mubr.bf16.vlgmr.msra.gmra.mxu1 %v1016_v42 }
 0x6b2   :  { %1449 = vmatpush3.bf16.msra.mxu0 %v1539_v46  ;;  %1464 = vmatprep.mubr.msk.bf16.mxu0 %vm1670_vm8, %v1669_v49  ;;  %v1421_v46 = vld [vmem:[%s2421_s6] ss:$0 sm:$0xff] }
 0x6b3   :  { %1450 = vmatprep.subr.bf16.mxu0 %v1669_v49  ;;  %1484 = vmatprep.mubr.msk.bf16.mxu1 %vm1670_vm8, %v1669_v49 }
 0x6b4   :  { %1469 = vmatpush3.bf16.msra.mxu1 %v1547_v34 }
 0x6b5   :  { %1470 = vmatprep.subr.bf16.mxu1 %v1669_v49 }
 0x6b6   :  { %1451 = vmatpush3.bf16.msra.mxu0 %v1540_v35 }
 0x6b7   :  { %1452 = vmatprep.subr.bf16.mxu0 %v1669_v49 }
 0x6b8   :  { %1471 = vmatpush3.bf16.msra.mxu1 %v1548_v37 }
 0x6b9   :  { %1472 = vmatprep.subr.bf16.mxu1 %v1669_v49 }
 0x6ba   :  { %1453 = vmatpush3.bf16.msra.mxu0 %v1541_v38 }
 0x6bb   :  { %1454 = vmatprep.subr.bf16.mxu0 %v1669_v49 }
 0x6bc   :  { %1473 = vmatpush3.bf16.msra.mxu1 %v1549_v51 }
 0x6bd   :  { %1474 = vmatprep.subr.bf16.mxu1 %v1669_v49 }
 0x6be   :  { %1455 = vmatpush3.bf16.msra.mxu0 %v1542_v1 }
 0x6bf   :  { %1456 = vmatprep.subr.bf16.mxu0 %v1669_v49 }
 0x6c0   :  { %1475 = vmatpush3.bf16.msra.mxu1 %v1550_v57 }
 0x6c1   :  { %1476 = vmatprep.subr.bf16.mxu1 %v1669_v49 }
 0x6c2   :  { %1457 = vmatpush3.bf16.msra.mxu0 %v1543_v60 }
 0x6c3   :  { %1458 = vmatprep.subr.bf16.mxu0 %v1669_v49 }
 0x6c4   :  { %1477 = vmatpush3.bf16.msra.mxu1 %v1551_v39 }
 0x6c5   :  { %1478 = vmatprep.subr.bf16.mxu1 %v1669_v49 }
 0x6c6   :  { %1459 = vmatpush3.bf16.msra.mxu0 %v1544_v61 }
 0x6c7   :  { %1460 = vmatprep.subr.bf16.mxu0 %v1669_v49 }
 0x6c8   :  { %1479 = vmatpush3.bf16.msra.mxu1 %v1552_v40 }
 0x6c9   :  { %1480 = vmatprep.subr.bf16.mxu1 %v1669_v49 }
 0x6ca   :  { %1461 = vmatpush3.bf16.msra.mxu0 %v1545_v62 }
 0x6cb   :  { %1462 = vmatprep.subr.bf16.mxu0 %v1669_v49 }
 0x6cc   :  { %1481 = vmatpush3.bf16.msra.mxu1 %v1553_v63 }
 0x6cd   :  { %1482 = vmatprep.subr.bf16.mxu1 %v1669_v49 }
 0x6ce   :  { %1463 = vmatpush3.bf16.msra.mxu0 %v1546_v33 }
 0x6d0   :  { %1483 = vmatpush3.bf16.msra.mxu1 %v1554_v3 }
 0x771   :  { %v1058_v45 = vpop.f32.mrf.mxu0  ;;  %v1099_v4 = vpop.f32.mrf.mxu1 }
 0x772   :  { %v1106_v5 = vadd.f32 %v1058_v45, %v1020_v43  ;;  %v1108_v16 = vadd.f32 %v1099_v4, %v1022_v9 }
 0x773   :  { %v1060_v6 = vpop.f32.mrf.mxu0  ;;  %v1101_v7 = vpop.f32.mrf.mxu1 }
 0x774   :  { %v1110_v8 = vmul.f32 0.5, %v1106_v5  ;;  %v1107_v10 = vadd.f32 %v1060_v6, %v1021_v44  ;;  %v1109_v18 = vadd.f32 %v1101_v7, %v1023_v17 }
 0x775   :  { %v1062_v11 = vpop.f32.mrf.mxu0  ;;  %v1103_v12 = vpop.f32.mrf.mxu1 }
 0x776   :  { %1625 = vtanh.f32 %v1110_v8  ;;  %v1114_v13 = vmul.f32 0.5, %v1107_v10  ;;  %v1119_v19 = vmul.f32 0.5, %v1109_v18 }
 0x777   :  { %v1063_v14 = vpop.f32.mrf.mxu0  ;;  %v1104_v15 = vpop.f32.mrf.mxu1 }
 0x778   :  { %1627 = vtanh.f32 %v1114_v13 }
 0x779   :  { %1629 = vtanh.f32 %v1108_v16 }
 0x77a   :  { %1631 = vtanh.f32 %v1119_v19 }
 0x783   :  { %v1626_v20 = vpop.eup %1625 }
 0x784   :  { %v1112_v21 = vmul.f32 0.5, %v1626_v20 }
 0x785   :  { %v1628_v22 = vpop.eup %1627 }
 0x786   :  { %v1113_v23 = vadd.f32 0.5, %v1112_v21  ;;  %v1116_v24 = vmul.f32 0.5, %v1628_v22  ;;  %v1630_v26 = vpop.eup %1629 }
 0x787   :  { %v1632_v30 = vpop.eup %1631 }
 0x788   :  { %v1117_v25 = vadd.f32 0.5, %v1116_v24  ;;  %v1124_v28 = vmul.f32 %v1630_v26, %v1113_v23  ;;  %v1121_v31 = vmul.f32 0.5, %v1632_v30 }
 0x78a   :  { %v1123_v27 = vmul.f32 %v1117_v25, %v2320_v50  ;;  %v1122_v32 = vadd.f32 0.5, %v1121_v31  ;;  %v1412_v50 = vld [vmem:[%s2420_s4] ss:$0 sm:$0xff] }
 0x78c   :  { %v1125_v29 = vadd.f32 %v1124_v28, %v1123_v27 }
 0x78e   :  { %1633 = vtanh.f32 %v1125_v29 }
 0x79b   :  { %v1634_v59 = vpop.eup %1633 }
 0x79c   :  { %v1127_v47 = vmul.f32 %v1634_v59, %v1122_v32 }
 0x79e   :  { %v1129_v48 = vsel %vm1128_vm9, %v1127_v47, %v2325_v58 }
 0x79f   :  { %v1130_v0 = vpack.c.bf16 %v1129_v48, %v1129_v48 }
 0x7a1   :  { %1465 = vmatmul.mubr.bf16.vlgmr.msra.gmra.mxu0 %v1130_v0 }
 0x861   :  { %v1236_v52 = vpop.f32.mrf.mxu0 }
 0x862   :  { %v1237_v53 = vadd.f32 %v1412_v50, %v1236_v52 }
 0x863   :  { %v1466_v54 = vpop.f32.mrf.mxu0 }
 0x864   :  { %v1242_v55 = vmax.f32 %v1237_v53, 0.0 }
 0x865   :  { %v1239_v56 = vpop.f32.mrf.mxu0 }
 0x866   :  { %v1243_v58 = vpack.c.bf16 %v1242_v55, %v1242_v55 }
 0x867   :  { %v1467_v42 = vpop.f32.mrf.mxu0 }
 0x868   :  { %1485 = vmatmul.mubr.bf16.vlgmr.msra.gmra.mxu1 %v1243_v58 }
 0x928   :  { %v1349_v49 = vpop.f32.mrf.mxu1 }
 0x929   :  { %v1350_v35 = vadd.f32 %v1421_v46, %v1349_v49 }
 0x92a   :  { %v1486_v38 = vpop.f32.mrf.mxu1 }
 0x92b   :  { %1355 = vst [vmem:[%s2422_s7] sm:$0xff] %v1350_v35 }
 0x92c   :  { %v1352_v1 = vpop.f32.mrf.mxu1 }
 0x92e   :  { %v1487_v60 = vpop.f32.mrf.mxu1 }

</bundles_post_ra>
